<compile_context>
chip_gen: v7x
topology: tpu7x:2x2x1
jax: 0.10.0
libtpu: 0.0.40
codegen_flags: <defaults>
</compile_context>

<pallas_src>
import math
import functools

import jax
import jax.numpy as jnp
from jax.experimental import pallas as pl
from jax.experimental.pallas import tpu as pltpu


def _layernorm_2d(x, gamma, beta, eps):
    # torch: a_2 * (x - mean) / (std + eps) + b_2 ; std is unbiased (divide by D-1).
    d = x.shape[-1]
    mean = jnp.mean(x, axis=-1, keepdims=True)
    xc = x - mean
    std = jnp.sqrt(jnp.sum(xc * xc, axis=-1, keepdims=True) * (1.0 / (d - 1)))
    inv = pl.reciprocal(std + eps, approx=True)      # EUP slot, off the VPU divide path
    return gamma * (xc * inv) + beta


def _encoder_layer_kernel(x_ref, maskb_ref,
                          ln0g_ref, ln0b_ref,
                          wqkvT_ref, bqkv_ref, woT_ref, bo_ref,
                          ln1g_ref, ln1b_ref,
                          w1T_ref, b1_ref, w2T_ref, b2_ref,
                          o_ref, *, n_heads, eps, mxu_dtype):
    x3 = x_ref[...].astype(jnp.float32)              # (bt, S, D)
    bt, S, D = x3.shape
    d_k = D // n_heads
    rows = bt * S
    x2 = x3.reshape(rows, D)

    # ---------- sublayer 0: x + dropout(self_attn(LayerNorm(x))) ----------
    h0 = _layernorm_2d(x2, ln0g_ref[...], ln0b_ref[...], eps)
    # fused QKV projection (bf16 operands, f32 accumulate; 1/sqrt(d_k) folded into Wq/bq)
    qkv = jnp.dot(h0.astype(mxu_dtype), wqkvT_ref[...],
                  preferred_element_type=jnp.float32) + bqkv_ref[...]
    qkv_lp = qkv.astype(mxu_dtype)                   # low-precision copy for attention dots

    def split_heads(base):
        # lane slices of one head each, stacked into a leading batch dim: (H*bt, S, d_k)
        cols = [qkv_lp[:, base + h * d_k: base + (h + 1) * d_k] for h in range(n_heads)]
        return jnp.stack(cols, axis=0).reshape(n_heads * bt, S, d_k)

    qh = split_heads(0)
    kh = split_heads(D)
    vh = split_heads(2 * D)

    # single batched score matmul over all heads, one mask broadcast, one softmax
    scores = jnp.einsum('bqd,bkd->bqk', qh, kh,
                        preferred_element_type=jnp.float32)       # (H*bt, S, S) f32
    maskb = maskb_ref[...]                                        # (bt, 1, S)
    s = (scores.reshape(n_heads, bt, S, S) + maskb[None]).reshape(n_heads * bt, S, S)
    s = s - jnp.max(s, axis=-1, keepdims=True)
    p = jnp.exp(s)
    p = p * pl.reciprocal(jnp.sum(p, axis=-1, keepdims=True), approx=True)

    ctx = jnp.einsum('bqk,bkd->bqd', p.astype(mxu_dtype), vh,
                     preferred_element_type=jnp.float32)          # (H*bt, S, d_k) f32
    ctx4 = ctx.reshape(n_heads, bt, S, d_k)
    ctx2 = jnp.concatenate([ctx4[h] for h in range(n_heads)], axis=-1).reshape(rows, D)

    attn = jnp.dot(ctx2.astype(mxu_dtype), woT_ref[...],
                   preferred_element_type=jnp.float32) + bo_ref[...]
    x1 = x2 + attn                                   # dropout = identity (eval mode)

    # ---------- sublayer 1: x1 + dropout(feed_forward(LayerNorm(x1))) ----------
    h1 = _layernorm_2d(x1, ln1g_ref[...], ln1b_ref[...], eps)
    ff = jnp.dot(h1.astype(mxu_dtype), w1T_ref[...],
                 preferred_element_type=jnp.float32) + b1_ref[...]
    ff = jnp.maximum(ff, 0.0)
    ff = jnp.dot(ff.astype(mxu_dtype), w2T_ref[...],
                 preferred_element_type=jnp.float32) + b2_ref[...]

    o_ref[...] = (x1 + ff).reshape(bt, S, D).astype(o_ref.dtype)


def _rep(shape):
    # weight block resident across the whole grid (constant index_map -> no re-DMA)
    return pl.BlockSpec(shape, lambda b: (0,) * len(shape))


def _choose_block_b(B, S, target_rows=512):
    """Largest divisor of B whose tile has <= target_rows rows, preferring grid >= 2."""
    divisors = [d for d in range(1, B + 1) if B % d == 0]
    fitting = [d for d in divisors if d * S <= target_rows] or [1]
    multi_step = [d for d in fitting if B // d >= 2]     # keep megacore / pipeline alive
    return max(multi_step) if multi_step else max(fitting)


def encoder_layer(x, mask, adj_matrix, edges_att, params, *,
                  n_heads, eps=1e-6, block_b=None, mxu_dtype=jnp.bfloat16):
    """x: (B, S, D); mask: (B, S) with 1.0 = valid node.  Returns (B, S, D)."""
    del adj_matrix, edges_att  # TODO(synk): used only by the unspecified MAT self_attn.
    B, S, D = x.shape
    d_k = D // n_heads
    scale = 1.0 / math.sqrt(d_k)

    # one-time parameter packing / scale folding (tiny host-side ops on params only);
    # MXU-bound weights go in as bf16, biases / LN params stay f32 (added post-accumulate)
    wqkvT = jnp.concatenate(
        [params['wq'].T * scale, params['wk'].T, params['wv'].T], axis=1).astype(mxu_dtype)
    bqkv = jnp.concatenate(
        [params['bq'] * scale, params['bk'], params['bv']]
    ).reshape(1, 3 * D).astype(jnp.float32)
    woT = params['wo'].T.astype(mxu_dtype)
    bo = params['bo'].reshape(1, D).astype(jnp.float32)
    w1T = params['w1'].T.astype(mxu_dtype)                                  # (D, Dff)
    b1 = params['b1'].reshape(1, -1).astype(jnp.float32)
    w2T = params['w2'].T.astype(mxu_dtype)                                  # (Dff, D)
    b2 = params['b2'].reshape(1, D).astype(jnp.float32)
    ln0_g = params['ln0_g'].reshape(1, D).astype(jnp.float32)
    ln0_b = params['ln0_b'].reshape(1, D).astype(jnp.float32)
    ln1_g = params['ln1_g'].reshape(1, D).astype(jnp.float32)
    ln1_b = params['ln1_b'].reshape(1, D).astype(jnp.float32)
    d_ff = w1T.shape[1]

    # additive key-mask bias, shape (B, 1, S)
    mask_bias = ((1.0 - mask.astype(jnp.float32)) * (-1e9)).reshape(B, 1, S)

    if block_b is None:
        block_b = _choose_block_b(B, S)
    assert B % block_b == 0
    grid = (B // block_b,)

    # advisory cost estimate for XLA scheduling around the custom call
    flops = int(2 * B * S * D * (4 * D + 2 * S + 2 * d_ff))
    transcendentals = int(B * S * (n_heads * S + n_heads + 2))
    bytes_accessed = int(
        2 * B * S * D * 4 + B * S * 4
        + (D * 3 * D + D * D + 2 * D * d_ff) * jnp.dtype(mxu_dtype).itemsize
        + (8 * D + d_ff) * 4)

    kernel = functools.partial(_encoder_layer_kernel, n_heads=n_heads, eps=eps,
                               mxu_dtype=mxu_dtype)

    out = pl.pallas_call(
        kernel,
        out_shape=jax.ShapeDtypeStruct((B, S, D), x.dtype),
        grid_spec=pltpu.PrefetchScalarGridSpec(
            num_scalar_prefetch=0,
            grid=grid,
            in_specs=[
                pl.BlockSpec((block_b, S, D), lambda b: (b, 0, 0)),   # x
                pl.BlockSpec((block_b, 1, S), lambda b: (b, 0, 0)),   # mask bias
                _rep((1, D)), _rep((1, D)),                           # ln0 gamma/beta
                _rep((D, 3 * D)), _rep((1, 3 * D)),                   # fused QKV
                _rep((D, D)), _rep((1, D)),                           # Wo, bo
                _rep((1, D)), _rep((1, D)),                           # ln1 gamma/beta
                _rep((D, d_ff)), _rep((1, d_ff)),                     # W1, b1
                _rep((d_ff, D)), _rep((1, D)),                        # W2, b2
            ],
            out_specs=pl.BlockSpec((block_b, S, D), lambda b: (b, 0, 0)),
        ),
        compiler_params=pltpu.CompilerParams(
            dimension_semantics=("parallel",),                        # megacore on v7x
            vmem_limit_bytes=32 * 1024 * 1024),
        cost_estimate=pl.CostEstimate(flops=flops,
                                      transcendentals=transcendentals,
                                      bytes_accessed=bytes_accessed),
    )(x, mask_bias, ln0_g, ln0_b, wqkvT, bqkv, woT, bo,
      ln1_g, ln1_b, w1T, b1, w2T, b2)
    return out


def _reference(x, mask, p, n_heads, eps):
    """Plain-JAX f32 reference for the same EncoderLayer forward."""
    def layernorm(v, g, b):
        mean = v.mean(-1, keepdims=True)
        c = v - mean
        std = jnp.sqrt((c * c).sum(-1, keepdims=True) / (v.shape[-1] - 1))
        return g * c / (std + eps) + b

    B, S, D = x.shape
    d_k = D // n_heads
    h0 = layernorm(x, p['ln0_g'], p['ln0_b'])
    q = h0 @ p['wq'].T + p['bq']
    k = h0 @ p['wk'].T + p['bk']
    v = h0 @ p['wv'].T + p['bv']

    def split(t):
        return t.reshape(B, S, n_heads, d_k).transpose(0, 2, 1, 3)   # (B, H, S, d_k)

    qh, kh, vh = split(q), split(k), split(v)
    scores = jnp.einsum('bhqd,bhkd->bhqk', qh, kh) / math.sqrt(d_k)
    scores = scores + (1.0 - mask)[:, None, None, :] * (-1e9)
    scores = scores - scores.max(-1, keepdims=True)
    pw = jnp.exp(scores)
    pw = pw / pw.sum(-1, keepdims=True)
    ctx = jnp.einsum('bhqk,bhkd->bhqd', pw, vh)
    ctx = ctx.transpose(0, 2, 1, 3).reshape(B, S, D)
    x1 = x + (ctx @ p['wo'].T + p['bo'])

    h1 = layernorm(x1, p['ln1_g'], p['ln1_b'])
    ff = jnp.maximum(h1 @ p['w1'].T + p['b1'], 0.0) @ p['w2'].T + p['b2']
    return x1 + ff


if __name__ == "__main__":
    # small shapes consistent with the module; d_model=128 keeps blocks lane-dense
    B, S, D, H, Dff = 2, 8, 128, 4, 256
    d_edge = 16
    eps = 1e-6

    key = jax.random.PRNGKey(0)
    ks = jax.random.split(key, 16)

    x = jax.random.normal(ks[0], (B, S, D), dtype=jnp.float32)
    mask = jnp.ones((B, S), dtype=jnp.float32).at[1, 6:].set(0.0)   # pad 2 nodes in batch 1
    adj_matrix = (jax.random.uniform(ks[1], (B, S, S)) > 0.5).astype(jnp.float32)
    edges_att = jax.random.normal(ks[2], (B, S, S, d_edge), dtype=jnp.float32)

    def lin(k, out_d, in_d, s=0.05):
        kw, kb = jax.random.split(k)
        return (jax.random.normal(kw, (out_d, in_d), jnp.float32) * s,
                jax.random.normal(kb, (out_d,), jnp.float32) * s)

    wq, bq = lin(ks[3], D, D)
    wk, bk = lin(ks[4], D, D)
    wv, bv = lin(ks[5], D, D)
    wo, bo = lin(ks[6], D, D)
    w1, b1 = lin(ks[7], Dff, D)
    w2, b2 = lin(ks[8], D, Dff)

    params = dict(
        wq=wq, bq=bq, wk=wk, bk=bk, wv=wv, bv=bv, wo=wo, bo=bo,
        w1=w1, b1=b1, w2=w2, b2=b2,
        ln0_g=1.0 + 0.1 * jax.random.normal(ks[9], (D,), jnp.float32),
        ln0_b=0.1 * jax.random.normal(ks[10], (D,), jnp.float32),
        ln1_g=1.0 + 0.1 * jax.random.normal(ks[11], (D,), jnp.float32),
        ln1_b=0.1 * jax.random.normal(ks[12], (D,), jnp.float32),
    )

    y = encoder_layer(x, mask, adj_matrix, edges_att, params, n_heads=H, eps=eps)
    y = jax.block_until_ready(y)

    ref = _reference(x, mask, params, H, eps)
    assert y.shape == (B, S, D)
    # bf16 MXU operands + approx reciprocals vs f32 reference -> looser tolerance
    assert jnp.allclose(y, ref, atol=2e-2, rtol=2e-2), \
        f"max abs diff = {float(jnp.max(jnp.abs(y - ref)))}"

    print("KERNEL_OK")
</pallas_src>

<mosaic_0001>
module attributes {stable_mosaic.version = 11 : i64} {
  func.func @_encoder_layer_kernel(%arg0: i32, %arg1: memref<1x8x128xf32, #tpu.memory_space<vmem>>, %arg2: memref<1x1x8xf32, #tpu.memory_space<vmem>>, %arg3: memref<1x128xf32, #tpu.memory_space<vmem>>, %arg4: memref<1x128xf32, #tpu.memory_space<vmem>>, %arg5: memref<128x384xbf16, #tpu.memory_space<vmem>>, %arg6: memref<1x384xf32, #tpu.memory_space<vmem>>, %arg7: memref<128x128xbf16, #tpu.memory_space<vmem>>, %arg8: memref<1x128xf32, #tpu.memory_space<vmem>>, %arg9: memref<1x128xf32, #tpu.memory_space<vmem>>, %arg10: memref<1x128xf32, #tpu.memory_space<vmem>>, %arg11: memref<128x256xbf16, #tpu.memory_space<vmem>>, %arg12: memref<1x256xf32, #tpu.memory_space<vmem>>, %arg13: memref<256x128xbf16, #tpu.memory_space<vmem>>, %arg14: memref<1x128xf32, #tpu.memory_space<vmem>>, %arg15: memref<1x8x128xf32, #tpu.memory_space<vmem>>) attributes {dimension_semantics = [#tpu.dimension_semantics<parallel>], iteration_bounds = array<i64: 2>, scalar_prefetch = 0 : i64, scratch_operands = 0 : i64, tpu.core_type = #tpu.core_type<tc>, window_params = [{transform_indices = @transform_0, window_bounds = array<i64: 1, 8, 128>}, {transform_indices = @transform_1, window_bounds = array<i64: 1, 1, 8>}, {pipeline_mode = #tpu.pipeline_mode<synchronous>, transform_indices = @transform_2, window_bounds = array<i64: 1, 128>}, {pipeline_mode = #tpu.pipeline_mode<synchronous>, transform_indices = @transform_3, window_bounds = array<i64: 1, 128>}, {pipeline_mode = #tpu.pipeline_mode<synchronous>, transform_indices = @transform_4, window_bounds = array<i64: 128, 384>}, {pipeline_mode = #tpu.pipeline_mode<synchronous>, transform_indices = @transform_5, window_bounds = array<i64: 1, 384>}, {pipeline_mode = #tpu.pipeline_mode<synchronous>, transform_indices = @transform_6, window_bounds = array<i64: 128, 128>}, {pipeline_mode = #tpu.pipeline_mode<synchronous>, transform_indices = @transform_7, window_bounds = array<i64: 1, 128>}, {pipeline_mode = #tpu.pipeline_mode<synchronous>, transform_indices = @transform_8, window_bounds = array<i64: 1, 128>}, {pipeline_mode = #tpu.pipeline_mode<synchronous>, transform_indices = @transform_9, window_bounds = array<i64: 1, 128>}, {pipeline_mode = #tpu.pipeline_mode<synchronous>, transform_indices = @transform_10, window_bounds = array<i64: 128, 256>}, {pipeline_mode = #tpu.pipeline_mode<synchronous>, transform_indices = @transform_11, window_bounds = array<i64: 1, 256>}, {pipeline_mode = #tpu.pipeline_mode<synchronous>, transform_indices = @transform_12, window_bounds = array<i64: 256, 128>}, {pipeline_mode = #tpu.pipeline_mode<synchronous>, transform_indices = @transform_13, window_bounds = array<i64: 1, 128>}, {transform_indices = @transform_14, window_bounds = array<i64: 1, 8, 128>}]} {
    %c0 = arith.constant 0 : index
    %c0_0 = arith.constant 0 : index
    %c0_1 = arith.constant 0 : index
    %0 = vector.load %arg1[%c0, %c0_0, %c0_1] : memref<1x8x128xf32, #tpu.memory_space<vmem>>, vector<1x8x128xf32>
    %1 = vector.shape_cast %0 : vector<1x8x128xf32> to vector<8x128xf32>
    %c0_2 = arith.constant 0 : index
    %c0_3 = arith.constant 0 : index
    %2 = vector.load %arg3[%c0_2, %c0_3] : memref<1x128xf32, #tpu.memory_space<vmem>>, vector<1x128xf32>
    %c0_4 = arith.constant 0 : index
    %c0_5 = arith.constant 0 : index
    %3 = vector.load %arg4[%c0_4, %c0_5] : memref<1x128xf32, #tpu.memory_space<vmem>>, vector<1x128xf32>
    %cst = arith.constant dense<0.000000e+00> : vector<8xf32>
    %4 = vector.multi_reduction <add>, %1, %cst [1] : vector<8x128xf32> to vector<8xf32>
    %5 = vector.shape_cast %4 : vector<8xf32> to vector<8x1xf32>
    %cst_6 = arith.constant 1.280000e+02 : f32
    %6 = vector.broadcast %cst_6 : f32 to vector<8x1xf32>
    %7 = arith.divf %5, %6 : vector<8x1xf32>
    %8 = vector.broadcast %7 : vector<8x1xf32> to vector<8x128xf32>
    %9 = arith.subf %1, %8 : vector<8x128xf32>
    %10 = arith.mulf %9, %9 : vector<8x128xf32>
    %cst_7 = arith.constant dense<0.000000e+00> : vector<8xf32>
    %11 = vector.multi_reduction <add>, %10, %cst_7 [1] : vector<8x128xf32> to vector<8xf32>
    %12 = vector.shape_cast %11 : vector<8xf32> to vector<8x1xf32>
    %cst_8 = arith.constant 0.00787401571 : f32
    %13 = vector.broadcast %cst_8 : f32 to vector<8x1xf32>
    %14 = arith.mulf %12, %13 : vector<8x1xf32>
    %15 = math.sqrt %14 : vector<8x1xf32>
    %cst_9 = arith.constant 9.99999997E-7 : f32
    %16 = vector.broadcast %cst_9 : f32 to vector<8x1xf32>
    %17 = arith.addf %15, %16 : vector<8x1xf32>
    %18 = tpu.reciprocal %17 {approx = true} : vector<8x1xf32> -> vector<8x1xf32>
    %19 = vector.broadcast %18 : vector<8x1xf32> to vector<8x128xf32>
    %20 = arith.mulf %9, %19 : vector<8x128xf32>
    %21 = vector.broadcast %2 : vector<1x128xf32> to vector<8x128xf32>
    %22 = arith.mulf %21, %20 : vector<8x128xf32>
    %23 = vector.broadcast %3 : vector<1x128xf32> to vector<8x128xf32>
    %24 = arith.addf %22, %23 : vector<8x128xf32>
    %25 = arith.truncf %24 : vector<8x128xf32> to vector<8x128xbf16>
    %c0_10 = arith.constant 0 : index
    %c0_11 = arith.constant 0 : index
    %26 = vector.load %arg5[%c0_10, %c0_11] : memref<128x384xbf16, #tpu.memory_space<vmem>>, vector<128x384xbf16>
    %cst_12 = arith.constant dense<0.000000e+00> : vector<8x384xf32>
    %27 = tpu.matmul %25, %26, %cst_12 {dimension_numbers = #tpu.dot_dimension_numbers<[1], [0], [0], [1], [0, 0, 1, 1], [], []>} : vector<8x128xbf16>, vector<128x384xbf16>, vector<8x384xf32> -> vector<8x384xf32>
    %c0_13 = arith.constant 0 : index
    %c0_14 = arith.constant 0 : index
    %28 = vector.load %arg6[%c0_13, %c0_14] : memref<1x384xf32, #tpu.memory_space<vmem>>, vector<1x384xf32>
    %29 = vector.broadcast %28 : vector<1x384xf32> to vector<8x384xf32>
    %30 = arith.addf %27, %29 : vector<8x384xf32>
    %31 = arith.truncf %30 : vector<8x384xf32> to vector<8x384xbf16>
    %32 = vector.extract_strided_slice %31 {offsets = [0, 0], sizes = [8, 32], strides = [1, 1]} : vector<8x384xbf16> to vector<8x32xbf16>
    %33 = vector.extract_strided_slice %31 {offsets = [0, 32], sizes = [8, 32], strides = [1, 1]} : vector<8x384xbf16> to vector<8x32xbf16>
    %34 = vector.extract_strided_slice %31 {offsets = [0, 64], sizes = [8, 32], strides = [1, 1]} : vector<8x384xbf16> to vector<8x32xbf16>
    %35 = vector.extract_strided_slice %31 {offsets = [0, 96], sizes = [8, 32], strides = [1, 1]} : vector<8x384xbf16> to vector<8x32xbf16>
    %36 = vector.shape_cast %32 : vector<8x32xbf16> to vector<1x8x32xbf16>
    %37 = vector.shape_cast %33 : vector<8x32xbf16> to vector<1x8x32xbf16>
    %38 = vector.shape_cast %34 : vector<8x32xbf16> to vector<1x8x32xbf16>
    %39 = vector.shape_cast %35 : vector<8x32xbf16> to vector<1x8x32xbf16>
    %40 = tpu.concatenate %36, %37, %38, %39 in 0 : vector<1x8x32xbf16>, vector<1x8x32xbf16>, vector<1x8x32xbf16>, vector<1x8x32xbf16> -> vector<4x8x32xbf16>
    %41 = vector.extract_strided_slice %31 {offsets = [0, 128], sizes = [8, 32], strides = [1, 1]} : vector<8x384xbf16> to vector<8x32xbf16>
    %42 = vector.extract_strided_slice %31 {offsets = [0, 160], sizes = [8, 32], strides = [1, 1]} : vector<8x384xbf16> to vector<8x32xbf16>
    %43 = vector.extract_strided_slice %31 {offsets = [0, 192], sizes = [8, 32], strides = [1, 1]} : vector<8x384xbf16> to vector<8x32xbf16>
    %44 = vector.extract_strided_slice %31 {offsets = [0, 224], sizes = [8, 32], strides = [1, 1]} : vector<8x384xbf16> to vector<8x32xbf16>
    %45 = vector.shape_cast %41 : vector<8x32xbf16> to vector<1x8x32xbf16>
    %46 = vector.shape_cast %42 : vector<8x32xbf16> to vector<1x8x32xbf16>
    %47 = vector.shape_cast %43 : vector<8x32xbf16> to vector<1x8x32xbf16>
    %48 = vector.shape_cast %44 : vector<8x32xbf16> to vector<1x8x32xbf16>
    %49 = tpu.concatenate %45, %46, %47, %48 in 0 : vector<1x8x32xbf16>, vector<1x8x32xbf16>, vector<1x8x32xbf16>, vector<1x8x32xbf16> -> vector<4x8x32xbf16>
    %50 = vector.extract_strided_slice %31 {offsets = [0, 256], sizes = [8, 32], strides = [1, 1]} : vector<8x384xbf16> to vector<8x32xbf16>
    %51 = vector.extract_strided_slice %31 {offsets = [0, 288], sizes = [8, 32], strides = [1, 1]} : vector<8x384xbf16> to vector<8x32xbf16>
    %52 = vector.extract_strided_slice %31 {offsets = [0, 320], sizes = [8, 32], strides = [1, 1]} : vector<8x384xbf16> to vector<8x32xbf16>
    %53 = vector.extract_strided_slice %31 {offsets = [0, 352], sizes = [8, 32], strides = [1, 1]} : vector<8x384xbf16> to vector<8x32xbf16>
    %54 = vector.shape_cast %50 : vector<8x32xbf16> to vector<1x8x32xbf16>
    %55 = vector.shape_cast %51 : vector<8x32xbf16> to vector<1x8x32xbf16>
    %56 = vector.shape_cast %52 : vector<8x32xbf16> to vector<1x8x32xbf16>
    %57 = vector.shape_cast %53 : vector<8x32xbf16> to vector<1x8x32xbf16>
    %58 = tpu.concatenate %54, %55, %56, %57 in 0 : vector<1x8x32xbf16>, vector<1x8x32xbf16>, vector<1x8x32xbf16>, vector<1x8x32xbf16> -> vector<4x8x32xbf16>
    "tpu.trace_start"() <{level = 10 : i32, message = "bqd,bkd->bqk"}> : () -> ()
    %cst_15 = arith.constant dense<0.000000e+00> : vector<4x8x8xf32>
    %59 = tpu.matmul %40, %49, %cst_15 {dimension_numbers = #tpu.dot_dimension_numbers<[2], [2], [1], [1], [0, 0, 0, 1, 1, 1], [0], [0]>} : vector<4x8x32xbf16>, vector<4x8x32xbf16>, vector<4x8x8xf32> -> vector<4x8x8xf32>
    "tpu.trace_stop"() : () -> ()
    %c0_16 = arith.constant 0 : index
    %c0_17 = arith.constant 0 : index
    %c0_18 = arith.constant 0 : index
    %60 = vector.load %arg2[%c0_16, %c0_17, %c0_18] : memref<1x1x8xf32, #tpu.memory_space<vmem>>, vector<1x1x8xf32>
    %61 = vector.shape_cast %59 : vector<4x8x8xf32> to vector<4x1x8x8xf32>
    %62 = vector.shape_cast %60 : vector<1x1x8xf32> to vector<1x1x1x8xf32>
    %63 = vector.broadcast %62 : vector<1x1x1x8xf32> to vector<4x1x8x8xf32>
    %64 = arith.addf %61, %63 : vector<4x1x8x8xf32>
    %65 = vector.shape_cast %64 : vector<4x1x8x8xf32> to vector<4x8x8xf32>
    %cst_19 = arith.constant dense<0xFF800000> : vector<4x8xf32>
    %66 = vector.multi_reduction <maximumf>, %65, %cst_19 [2] : vector<4x8x8xf32> to vector<4x8xf32>
    %67 = vector.shape_cast %66 : vector<4x8xf32> to vector<4x8x1xf32>
    %68 = vector.broadcast %67 : vector<4x8x1xf32> to vector<4x8x8xf32>
    %69 = arith.subf %65, %68 : vector<4x8x8xf32>
    %70 = math.exp %69 : vector<4x8x8xf32>
    %cst_20 = arith.constant dense<0.000000e+00> : vector<4x8xf32>
    %71 = vector.multi_reduction <add>, %70, %cst_20 [2] : vector<4x8x8xf32> to vector<4x8xf32>
    %72 = vector.shape_cast %71 : vector<4x8xf32> to vector<4x8x1xf32>
    %73 = tpu.reciprocal %72 {approx = true} : vector<4x8x1xf32> -> vector<4x8x1xf32>
    %74 = vector.broadcast %73 : vector<4x8x1xf32> to vector<4x8x8xf32>
    %75 = arith.mulf %70, %74 : vector<4x8x8xf32>
    %76 = arith.truncf %75 : vector<4x8x8xf32> to vector<4x8x8xbf16>
    "tpu.trace_start"() <{level = 10 : i32, message = "bqk,bkd->bqd"}> : () -> ()
    %cst_21 = arith.constant dense<0.000000e+00> : vector<4x8x32xf32>
    %77 = tpu.matmul %76, %58, %cst_21 {dimension_numbers = #tpu.dot_dimension_numbers<[2], [1], [1], [2], [0, 0, 0, 1, 1, 2], [0], [0]>} : vector<4x8x8xbf16>, vector<4x8x32xbf16>, vector<4x8x32xf32> -> vector<4x8x32xf32>
    "tpu.trace_stop"() : () -> ()
    %78 = vector.shape_cast %77 : vector<4x8x32xf32> to vector<4x1x8x32xf32>
    %79 = vector.extract_strided_slice %78 {offsets = [0, 0, 0, 0], sizes = [1, 1, 8, 32], strides = [1, 1, 1, 1]} : vector<4x1x8x32xf32> to vector<1x1x8x32xf32>
    %80 = vector.shape_cast %79 : vector<1x1x8x32xf32> to vector<1x8x32xf32>
    %81 = vector.extract_strided_slice %78 {offsets = [1, 0, 0, 0], sizes = [1, 1, 8, 32], strides = [1, 1, 1, 1]} : vector<4x1x8x32xf32> to vector<1x1x8x32xf32>
    %82 = vector.shape_cast %81 : vector<1x1x8x32xf32> to vector<1x8x32xf32>
    %83 = vector.extract_strided_slice %78 {offsets = [2, 0, 0, 0], sizes = [1, 1, 8, 32], strides = [1, 1, 1, 1]} : vector<4x1x8x32xf32> to vector<1x1x8x32xf32>
    %84 = vector.shape_cast %83 : vector<1x1x8x32xf32> to vector<1x8x32xf32>
    %85 = vector.extract_strided_slice %78 {offsets = [3, 0, 0, 0], sizes = [1, 1, 8, 32], strides = [1, 1, 1, 1]} : vector<4x1x8x32xf32> to vector<1x1x8x32xf32>
    %86 = vector.shape_cast %85 : vector<1x1x8x32xf32> to vector<1x8x32xf32>
    %87 = tpu.concatenate %80, %82, %84, %86 in 2 : vector<1x8x32xf32>, vector<1x8x32xf32>, vector<1x8x32xf32>, vector<1x8x32xf32> -> vector<1x8x128xf32>
    %88 = vector.shape_cast %87 : vector<1x8x128xf32> to vector<8x128xf32>
    %89 = arith.truncf %88 : vector<8x128xf32> to vector<8x128xbf16>
    %c0_22 = arith.constant 0 : index
    %c0_23 = arith.constant 0 : index
    %90 = vector.load %arg7[%c0_22, %c0_23] : memref<128x128xbf16, #tpu.memory_space<vmem>>, vector<128x128xbf16>
    %cst_24 = arith.constant dense<0.000000e+00> : vector<8x128xf32>
    %91 = tpu.matmul %89, %90, %cst_24 {dimension_numbers = #tpu.dot_dimension_numbers<[1], [0], [0], [1], [0, 0, 1, 1], [], []>} : vector<8x128xbf16>, vector<128x128xbf16>, vector<8x128xf32> -> vector<8x128xf32>
    %c0_25 = arith.constant 0 : index
    %c0_26 = arith.constant 0 : index
    %92 = vector.load %arg8[%c0_25, %c0_26] : memref<1x128xf32, #tpu.memory_space<vmem>>, vector<1x128xf32>
    %93 = vector.broadcast %92 : vector<1x128xf32> to vector<8x128xf32>
    %94 = arith.addf %91, %93 : vector<8x128xf32>
    %95 = arith.addf %1, %94 : vector<8x128xf32>
    %c0_27 = arith.constant 0 : index
    %c0_28 = arith.constant 0 : index
    %96 = vector.load %arg9[%c0_27, %c0_28] : memref<1x128xf32, #tpu.memory_space<vmem>>, vector<1x128xf32>
    %c0_29 = arith.constant 0 : index
    %c0_30 = arith.constant 0 : index
    %97 = vector.load %arg10[%c0_29, %c0_30] : memref<1x128xf32, #tpu.memory_space<vmem>>, vector<1x128xf32>
    %cst_31 = arith.constant dense<0.000000e+00> : vector<8xf32>
    %98 = vector.multi_reduction <add>, %95, %cst_31 [1] : vector<8x128xf32> to vector<8xf32>
    %99 = vector.shape_cast %98 : vector<8xf32> to vector<8x1xf32>
    %cst_32 = arith.constant 1.280000e+02 : f32
    %100 = vector.broadcast %cst_32 : f32 to vector<8x1xf32>
    %101 = arith.divf %99, %100 : vector<8x1xf32>
    %102 = vector.broadcast %101 : vector<8x1xf32> to vector<8x128xf32>
    %103 = arith.subf %95, %102 : vector<8x128xf32>
    %104 = arith.mulf %103, %103 : vector<8x128xf32>
    %cst_33 = arith.constant dense<0.000000e+00> : vector<8xf32>
    %105 = vector.multi_reduction <add>, %104, %cst_33 [1] : vector<8x128xf32> to vector<8xf32>
    %106 = vector.shape_cast %105 : vector<8xf32> to vector<8x1xf32>
    %cst_34 = arith.constant 0.00787401571 : f32
    %107 = vector.broadcast %cst_34 : f32 to vector<8x1xf32>
    %108 = arith.mulf %106, %107 : vector<8x1xf32>
    %109 = math.sqrt %108 : vector<8x1xf32>
    %cst_35 = arith.constant 9.99999997E-7 : f32
    %110 = vector.broadcast %cst_35 : f32 to vector<8x1xf32>
    %111 = arith.addf %109, %110 : vector<8x1xf32>
    %112 = tpu.reciprocal %111 {approx = true} : vector<8x1xf32> -> vector<8x1xf32>
    %113 = vector.broadcast %112 : vector<8x1xf32> to vector<8x128xf32>
    %114 = arith.mulf %103, %113 : vector<8x128xf32>
    %115 = vector.broadcast %96 : vector<1x128xf32> to vector<8x128xf32>
    %116 = arith.mulf %115, %114 : vector<8x128xf32>
    %117 = vector.broadcast %97 : vector<1x128xf32> to vector<8x128xf32>
    %118 = arith.addf %116, %117 : vector<8x128xf32>
    %119 = arith.truncf %118 : vector<8x128xf32> to vector<8x128xbf16>
    %c0_36 = arith.constant 0 : index
    %c0_37 = arith.constant 0 : index
    %120 = vector.load %arg11[%c0_36, %c0_37] : memref<128x256xbf16, #tpu.memory_space<vmem>>, vector<128x256xbf16>
    %cst_38 = arith.constant dense<0.000000e+00> : vector<8x256xf32>
    %121 = tpu.matmul %119, %120, %cst_38 {dimension_numbers = #tpu.dot_dimension_numbers<[1], [0], [0], [1], [0, 0, 1, 1], [], []>} : vector<8x128xbf16>, vector<128x256xbf16>, vector<8x256xf32> -> vector<8x256xf32>
    %c0_39 = arith.constant 0 : index
    %c0_40 = arith.constant 0 : index
    %122 = vector.load %arg12[%c0_39, %c0_40] : memref<1x256xf32, #tpu.memory_space<vmem>>, vector<1x256xf32>
    %123 = vector.broadcast %122 : vector<1x256xf32> to vector<8x256xf32>
    %124 = arith.addf %121, %123 : vector<8x256xf32>
    %cst_41 = arith.constant 0.000000e+00 : f32
    %125 = vector.broadcast %cst_41 : f32 to vector<8x256xf32>
    %126 = arith.maximumf %124, %125 : vector<8x256xf32>
    %127 = arith.truncf %126 : vector<8x256xf32> to vector<8x256xbf16>
    %c0_42 = arith.constant 0 : index
    %c0_43 = arith.constant 0 : index
    %128 = vector.load %arg13[%c0_42, %c0_43] : memref<256x128xbf16, #tpu.memory_space<vmem>>, vector<256x128xbf16>
    %cst_44 = arith.constant dense<0.000000e+00> : vector<8x128xf32>
    %129 = tpu.matmul %127, %128, %cst_44 {dimension_numbers = #tpu.dot_dimension_numbers<[1], [0], [0], [1], [0, 0, 1, 1], [], []>} : vector<8x256xbf16>, vector<256x128xbf16>, vector<8x128xf32> -> vector<8x128xf32>
    %c0_45 = arith.constant 0 : index
    %c0_46 = arith.constant 0 : index
    %130 = vector.load %arg14[%c0_45, %c0_46] : memref<1x128xf32, #tpu.memory_space<vmem>>, vector<1x128xf32>
    %131 = vector.broadcast %130 : vector<1x128xf32> to vector<8x128xf32>
    %132 = arith.addf %129, %131 : vector<8x128xf32>
    %133 = arith.addf %95, %132 : vector<8x128xf32>
    %134 = vector.shape_cast %133 : vector<8x128xf32> to vector<1x8x128xf32>
    %c0_47 = arith.constant 0 : index
    %c0_48 = arith.constant 0 : index
    %c0_49 = arith.constant 0 : index
    %135 = vector.load %arg15[%c0_47, %c0_48, %c0_49] : memref<1x8x128xf32, #tpu.memory_space<vmem>>, vector<1x8x128xf32>
    tpu.vector_store %arg15[%c0_47, %c0_48, %c0_49], %134 {strides = array<i32>} : memref<1x8x128xf32, #tpu.memory_space<vmem>>, vector<1x8x128xf32>,
    return
  }
  func.func @transform_0(%arg0: i32) -> (i32, i32, i32) {
    %c0_i32 = arith.constant 0 : i32
    %c0_i32_0 = arith.constant 0 : i32
    %c0_i32_1 = arith.constant 0 : i32
    return %arg0, %c0_i32, %c0_i32_0 : i32, i32, i32
  }
  func.func @transform_1(%arg0: i32) -> (i32, i32, i32) {
    %c0_i32 = arith.constant 0 : i32
    %c0_i32_0 = arith.constant 0 : i32
    %c0_i32_1 = arith.constant 0 : i32
    return %arg0, %c0_i32, %c0_i32_0 : i32, i32, i32
  }
  func.func @transform_2(%arg0: i32) -> (i32, i32) {
    %c0_i32 = arith.constant 0 : i32
    %c0_i32_0 = arith.constant 0 : i32
    %c0_i32_1 = arith.constant 0 : i32
    return %c0_i32, %c0_i32_0 : i32, i32
  }
  func.func @transform_3(%arg0: i32) -> (i32, i32) {
    %c0_i32 = arith.constant 0 : i32
    %c0_i32_0 = arith.constant 0 : i32
    %c0_i32_1 = arith.constant 0 : i32
    return %c0_i32, %c0_i32_0 : i32, i32
  }
  func.func @transform_4(%arg0: i32) -> (i32, i32) {
    %c0_i32 = arith.constant 0 : i32
    %c0_i32_0 = arith.constant 0 : i32
    %c0_i32_1 = arith.constant 0 : i32
    return %c0_i32, %c0_i32_0 : i32, i32
  }
  func.func @transform_5(%arg0: i32) -> (i32, i32) {
    %c0_i32 = arith.constant 0 : i32
    %c0_i32_0 = arith.constant 0 : i32
    %c0_i32_1 = arith.constant 0 : i32
    return %c0_i32, %c0_i32_0 : i32, i32
  }
  func.func @transform_6(%arg0: i32) -> (i32, i32) {
    %c0_i32 = arith.constant 0 : i32
    %c0_i32_0 = arith.constant 0 : i32
    %c0_i32_1 = arith.constant 0 : i32
    return %c0_i32, %c0_i32_0 : i32, i32
  }
  func.func @transform_7(%arg0: i32) -> (i32, i32) {
    %c0_i32 = arith.constant 0 : i32
    %c0_i32_0 = arith.constant 0 : i32
    %c0_i32_1 = arith.constant 0 : i32
    return %c0_i32, %c0_i32_0 : i32, i32
  }
  func.func @transform_8(%arg0: i32) -> (i32, i32) {
    %c0_i32 = arith.constant 0 : i32
    %c0_i32_0 = arith.constant 0 : i32
    %c0_i32_1 = arith.constant 0 : i32
    return %c0_i32, %c0_i32_0 : i32, i32
  }
  func.func @transform_9(%arg0: i32) -> (i32, i32) {
    %c0_i32 = arith.constant 0 : i32
    %c0_i32_0 = arith.constant 0 : i32
    %c0_i32_1 = arith.constant 0 : i32
    return %c0_i32, %c0_i32_0 : i32, i32
  }
  func.func @transform_10(%arg0: i32) -> (i32, i32) {
    %c0_i32 = arith.constant 0 : i32
    %c0_i32_0 = arith.constant 0 : i32
    %c0_i32_1 = arith.constant 0 : i32
    return %c0_i32, %c0_i32_0 : i32, i32
  }
  func.func @transform_11(%arg0: i32) -> (i32, i32) {
    %c0_i32 = arith.constant 0 : i32
    %c0_i32_0 = arith.constant 0 : i32
    %c0_i32_1 = arith.constant 0 : i32
    return %c0_i32, %c0_i32_0 : i32, i32
  }
  func.func @transform_12(%arg0: i32) -> (i32, i32) {
    %c0_i32 = arith.constant 0 : i32
    %c0_i32_0 = arith.constant 0 : i32
    %c0_i32_1 = arith.constant 0 : i32
    return %c0_i32, %c0_i32_0 : i32, i32
  }
  func.func @transform_13(%arg0: i32) -> (i32, i32) {
    %c0_i32 = arith.constant 0 : i32
    %c0_i32_0 = arith.constant 0 : i32
    %c0_i32_1 = arith.constant 0 : i32
    return %c0_i32, %c0_i32_0 : i32, i32
  }
  func.func @transform_14(%arg0: i32) -> (i32, i32, i32) {
    %c0_i32 = arith.constant 0 : i32
    %c0_i32_0 = arith.constant 0 : i32
    %c0_i32_1 = arith.constant 0 : i32
    return %arg0, %c0_i32, %c0_i32_0 : i32, i32, i32
  }
}

</mosaic_0001>

<bundles_post_ra>
// kernel: tpu_custom_call.1
= control target key start
LH: loop header
LB: loop body
LE: loop exit
PB: predicated region body
PF: predicated region fallthrough
CT: control target
= control target key end

     0   :  { %s3211_s0 = inlined_call_operand.hbm [shape: f32[2,8,128], index: 0, kind: input, shape index: {}]   ;;  %s3212_s1 = inlined_call_operand.vmem [shape: f32[2,1,8], index: 1, kind: input, shape index: {}]   ;;  %s3213_s2 = inlined_call_operand.hbm [shape: f32[1,128], index: 2, kind: input, shape index: {}]   ;;  %s3214_s3 = inlined_call_operand.vmem [shape: f32[1,128], index: 3, kind: input, shape index: {}]   ;;  %s3215_s4 = inlined_call_operand.hbm [shape: bf16[128,384], index: 4, kind: input, shape index: {}]   ;;  %s3216_s5 = inlined_call_operand.vmem [shape: f32[1,384], index: 5, kind: input, shape index: {}]   ;;  %s3217_s6 = inlined_call_operand.hbm [shape: bf16[128,128], index: 6, kind: input, shape index: {}]   ;;  %s3218_s7 = inlined_call_operand.vmem [shape: f32[1,128], index: 7, kind: input, shape index: {}]   ;;  %s3219_s8 = inlined_call_operand.vmem [shape: f32[1,128], index: 8, kind: input, shape index: {}]   ;;  %s3220_s9 = inlined_call_operand.vmem [shape: f32[1,128], index: 9, kind: input, shape index: {}]   ;;  %s3221_s10 = inlined_call_operand.hbm [shape: bf16[128,256], index: 10, kind: input, shape index: {}]   ;;  %s3222_s11 = inlined_call_operand.vmem [shape: f32[1,256], index: 11, kind: input, shape index: {}]   ;;  %s3223_s12 = inlined_call_operand.hbm [shape: bf16[256,128], index: 12, kind: input, shape index: {}]   ;;  %s3224_s13 = inlined_call_operand.vmem [shape: f32[1,128], index: 13, kind: input, shape index: {}]   ;;  %s3225_s14 = inlined_call_operand.hbm [shape: f32[2,8,128], index: 14, kind: output, shape index: {}]  }
   0x1   :  { %3232 = sst [smem:[#allocation19_spill]] %s3213_s2 }
   0x2   :  { %3233 = sst [smem:[#allocation20_spill]] %s3217_s6 }
   0x3   :  { %3234 = sst [smem:[#allocation21_spill]] %s3220_s9 }
   0x4   :  { %3235 = sst [smem:[#allocation22_spill]] %s3222_s11 }
   0x5   :  { %3236 = sst [smem:[#allocation23_spill]] %s3224_s13 }
   0x6   :  { %3237 = sst [smem:[#allocation24_spill]] %s3225_s14 }
   0x7   :  { %19 = vsyncpa [#allocation3], 0 }
   0x8   :  { %21 = vsyncpa [#allocation3 + $0x1], 0 }
   0x9   :  { %22 = vsyncpa [#allocation6], 0 }
   0xa   :  { %23 = vsyncpa [#allocation9], 0 }
   0xb   :  { %24 = vsyncpa [#allocation12], 0 }
   0xc   :  { %25 = vsyncpa [#allocation4], 0 }
   0xd   :  { %27 = vsyncpa [#allocation4 + $0x1], 0  ;;  %s2756_s29 = smov 0   ;;  %s2758_s30 = smov 0  }
   0xe   :  { %s2760_s15 = smov 0   ;;  %s2762_s16 = smov 0  }
   0xf LB: > { %s2662_s17 = smov [#allocation5]   ;;  %s2777_s19 = sadd.s32 4294967295, %s2660_s16   ;;  %s2660_s16 = sphi %s2762_s16, %s3267_s16   ;;  %s2656_s15 = sphi %s2760_s15, %s3266_s15   ;;  %s2652_s30 = sphi %s2758_s30, %s3265_s30   ;;  %s2648_s29 = sphi %s2756_s29, %s3264_s29  }
  0x10   : > { %s381_s18 = sshll.u32 %s2662_s17, 4  ;;  %p1955_p0 = scmp.ge.s32.totalorder %s2660_s16, 1  ;;  %s2782_s18 = int_to_ptr.vmem [resolvable:$true] %s381_s18 }
  0x11   : > { %p3229_p1 = scmp.eq.s32.totalorder %s2777_s19, 0  ;;  %p368_p2 = scmp.lt.s32.totalorder %s2660_s16, 3 }
  0x12   : > { %s2663_s21 = smov [#allocation8]   ;;  %s2664_s24 = smov [#allocation7]  }
  0x13   : > { %p2784_p3 = pnand %p1955_p0, %p368_p2  ;;  %s410_s22 = sshll.u32 %s2663_s21, 4  ;;  %s2791_s22 = int_to_ptr.vmem [resolvable:$true] %s410_s22 }
  0x14   : > { %s394_s25 = sshll.u32 %s2664_s24, 4  ;;  %s3240_s2 = sld [smem:[#allocation19_spill]]  ;;  %s2799_s25 = int_to_ptr.vmem [resolvable:$true] %s394_s25 }
  0x15   : > { %s3238_s20 = scalar_select %p2784_p3, 1, 0 }
  0x16   : > { %p2223_p5 = pneg %p2784_p3 }
  0x18   : > { %p2795_p6 = pnand %p2223_p5, %p3229_p1 }
  0x1a   : > { %s2412_s28 = scalar_lea.hbm %s3240_s2, 16  ;;  %p2809_p8 = pneg %p2795_p6 }
  0x1b   : > { %p2413_p7 = scmp.ne.s32.totalorder %s3240_s2, %s2412_s28  ;;  %p2419_p11 = scmp.lt.u32.totalorder %s2412_s28, %s3240_s2 }
  0x1d   : > { %p2415_p9 = pnand %p2809_p8, %p2413_p7 }
  0x1f   : > { %p2416_p10 = pneg %p2415_p9 }
  0x21   : > { %p2421_p12 = pnand %p2419_p11, %p2416_p10 }
  0x23   : > { %2424 = shalt.err (!%p2421_p12)
}
  0x24   : > { %s2425_s14 = scalar_lea.vmem %s2782_s18, 16  ;;  %s2432_s26 = scalar_lea.vmem %s2782_s18, 32 }
  0x25   : > { %p2426_p13 = scmp.ne.s32.totalorder %s2782_s18, %s2425_s14  ;;  %p2433_p5 = scmp.lt.s32.totalorder %s2782_s18, %s2782_s18 }
  0x26   : > { %p2434_p7 = scmp.lt.s32.totalorder %s2432_s26, %s2425_s14 }
  0x27   : > { %p2428_p0 = pnand %p2426_p13, %p2809_p8 }
  0x28   : > { %p2435_p9 = por %p2434_p7, %p2433_p5 }
  0x29   : > { %p2429_p2 = pneg %p2428_p0 }
  0x2b   : > { %p2436_p4 = pnand %p2435_p9, %p2429_p2 }
  0x2d   : > { %2439 = shalt.err (!%p2436_p4)
}
  0x2e   : > { %2226 = dma.hbm_to_vmem [thread:$0]  (!%p2795_p6), %s3240_s2, 16, %s2782_s18, [#allocation6]  }
  0x2f   : > { %s3242_s6 = sld [smem:[#allocation20_spill]] }
  0x35   : > { %s2440_s24 = scalar_lea.hbm %s3242_s6, 1024 }
  0x36   : > { %p2441_p10 = scmp.ne.s32.totalorder %s3242_s6, %s2440_s24  ;;  %p2447_p4 = scmp.lt.u32.totalorder %s2440_s24, %s3242_s6 }
  0x38   : > { %p2443_p11 = pnand %p2441_p10, %p2809_p8 }
  0x3a   : > { %p2444_p12 = pneg %p2443_p11 }
  0x3c   : > { %p2449_p13 = pnand %p2447_p4, %p2444_p12 }
  0x3e   : > { %2452 = shalt.err (!%p2449_p13)
}
  0x3f   : > { %s2453_s18 = scalar_lea.vmem %s2791_s22, 1024  ;;  %p2461_p7 = scmp.lt.s32.totalorder %s2791_s22, %s2791_s22 }
  0x40   : > { %p2454_p0 = scmp.ne.s32.totalorder %s2791_s22, %s2453_s18  ;;  %p2462_p9 = scmp.lt.s32.totalorder %s2453_s18, %s2453_s18 }
  0x42   : > { %p2456_p2 = pnand %p2454_p0, %p2809_p8  ;;  %p2463_p10 = por %p2462_p9, %p2461_p7 }
  0x44   : > { %p2457_p5 = pneg %p2456_p2 }
  0x46   : > { %p2464_p11 = pnand %p2463_p10, %p2457_p5 }
  0x48   : > { %2467 = shalt.err (!%p2464_p11)
}
  0x49   : > { %s3227_s9 = smov 64   ;;  %s3228_s11 = smov 4  }
  0x4a   : > { %2232 = dma.hbm_to_vmem [thread:$0]  (!%p2795_p6), %s3242_s6, 1024, %s2791_s22, [#allocation9], %s3227_s9, %s3227_s9, %s3228_s11  }
  0x4b   : > { %s2468_s24 = scalar_lea.hbm %s3215_s4, 3072 }
  0x4c   : > { %p2469_p12 = scmp.ne.s32.totalorder %s3215_s4, %s2468_s24  ;;  %p2475_p0 = scmp.lt.u32.totalorder %s2468_s24, %s3215_s4 }
  0x4e   : > { %p2471_p4 = pnand %p2469_p12, %p2809_p8 }
  0x50   : > { %p2472_p13 = pneg %p2471_p4 }
  0x52   : > { %p2477_p2 = pnand %p2475_p0, %p2472_p13 }
  0x54   : > { %2480 = shalt.err (!%p2477_p2)
}
  0x55   : > { %s2481_s22 = scalar_lea.vmem %s2799_s25, 3072  ;;  %p2489_p10 = scmp.lt.s32.totalorder %s2799_s25, %s2799_s25 }
  0x56   : > { %p2482_p5 = scmp.ne.s32.totalorder %s2799_s25, %s2481_s22  ;;  %p2490_p11 = scmp.lt.s32.totalorder %s2481_s22, %s2481_s22 }
  0x58   : > { %p2484_p7 = pnand %p2482_p5, %p2809_p8  ;;  %p2491_p12 = por %p2490_p11, %p2489_p10 }
  0x5a   : > { %p2485_p9 = pneg %p2484_p7 }
  0x5c   : > { %p2492_p4 = pnand %p2491_p12, %p2485_p9 }
  0x5e   : > { %2495 = shalt.err (!%p2492_p4)
}
  0x5f   : > { %s2667_s13 = smov 192   ;;  %s2668_s2 = smov 12  }
  0x60   : > { %2229 = dma.hbm_to_vmem [thread:$0]  (!%p2795_p6), %s3215_s4, 3072, %s2799_s25, [#allocation6], %s2667_s13, %s2667_s13, %s2668_s2  }
  0x61   : > { %s2669_s17 = smov [#allocation10]   ;;  %s2496_s18 = scalar_lea.hbm %s3221_s10, 2048 }
  0x62   : > { %s432_s24 = sshll.u32 %s2669_s17, 4  ;;  %p2497_p13 = scmp.ne.s32.totalorder %s3221_s10, %s2496_s18  ;;  %s433_s24 = int_to_ptr.vmem [resolvable:$true] %s432_s24 }
  0x63   : > { %p2503_p5 = scmp.lt.u32.totalorder %s2496_s18, %s3221_s10 }
  0x64   : > { %p2499_p0 = pnand %p2497_p13, %p2809_p8 }
  0x66   : > { %p2500_p2 = pneg %p2499_p0 }
  0x68   : > { %p2505_p7 = pnand %p2503_p5, %p2500_p2 }
  0x6a   : > { %2508 = shalt.err (!%p2505_p7)
}
  0x6b   : > { %s2509_s25 = scalar_lea.vmem %s433_s24, 2048  ;;  %p2517_p12 = scmp.lt.s32.totalorder %s433_s24, %s433_s24 }
  0x6c   : > { %p2510_p9 = scmp.ne.s32.totalorder %s433_s24, %s2509_s25  ;;  %p2518_p4 = scmp.lt.s32.totalorder %s2509_s25, %s2509_s25 }
  0x6e   : > { %p2512_p10 = pnand %p2510_p9, %p2809_p8  ;;  %p2519_p1 = por %p2518_p4, %p2517_p12 }
  0x70   : > { %p2513_p11 = pneg %p2512_p10 }
  0x72   : > { %p2520_p3 = pnand %p2519_p1, %p2513_p11 }
  0x74   : > { %2523 = shalt.err (!%p2520_p3)
}
  0x75   : > { %s2670_s9 = smov 128   ;;  %s2671_s13 = smov 8  }
  0x76   : > { %2235 = dma.hbm_to_vmem [thread:$0]  (!%p2795_p6), %s3221_s10, 2048, %s433_s24, [#allocation9], %s2670_s9, %s2670_s9, %s2671_s13  }
  0x77   : > { %s2672_s2 = smov [#allocation11]   ;;  %s2524_s14 = scalar_lea.hbm %s3223_s12, 2048 }
  0x78   : > { %s448_s27 = sshll.u32 %s2672_s2, 4  ;;  %p2525_p1 = scmp.ne.s32.totalorder %s3223_s12, %s2524_s14  ;;  %s449_s27 = int_to_ptr.vmem [resolvable:$true] %s448_s27 }
  0x79   : > { %p2531_p0 = scmp.lt.u32.totalorder %s2524_s14, %s3223_s12 }
  0x7a   : > { %p2527_p3 = pnand %p2525_p1, %p2809_p8 }
  0x7c   : > { %p2528_p13 = pneg %p2527_p3 }
  0x7e   : > { %p2533_p2 = pnand %p2531_p0, %p2528_p13 }
  0x80   : > { %2536 = shalt.err (!%p2533_p2)
}
  0x81   : > { %s2537_s24 = scalar_lea.vmem %s449_s27, 2048  ;;  %p2545_p10 = scmp.lt.s32.totalorder %s449_s27, %s449_s27 }
  0x82   : > { %p2538_p5 = scmp.ne.s32.totalorder %s449_s27, %s2537_s24  ;;  %p2546_p11 = scmp.lt.s32.totalorder %s2537_s24, %s2537_s24 }
  0x84   : > { %p2540_p7 = pnand %p2538_p5, %p2809_p8  ;;  %p2547_p12 = por %p2546_p11, %p2545_p10 }
  0x86   : > { %p2541_p9 = pneg %p2540_p7 }
  0x88   : > { %p2548_p4 = pnand %p2547_p12, %p2541_p9 }
  0x8a   : > { %2551 = shalt.err (!%p2548_p4)
}
  0x8b   : > { %s3243_s9 = smov 4   ;;  %s3244_s13 = smov 64  }
  0x8c   : > { %2238 = dma.hbm_to_vmem [thread:$0]  (!%p2795_p6), %s3223_s12, 2048, %s449_s27, [#allocation12], %s3244_s13, %s3244_s13, %s3243_s9  }
  0x8d   : > { %s1954_s23 = sadd.s32 4294967294, %s2660_s16   ;;  %s2921_s21 = sadd.s32 1, %s2660_s16  }
  0x8e   : > { %s40_s2 = sadd.s32 1, %s2656_s15  ;;  %s37_s28 = ssub.s32 %s2660_s16, %s2921_s21 }
  0x8f   : > { %p47_p8 = scmp.ne.s32.totalorder %s2656_s15, %s2652_s30  ;;  %p38_p1 = scmp.eq.s32.totalorder %s37_s28, 0 }
  0x90   : > { %p48_p3 = scmp.eq.s32.totalorder %s2660_s16, 0  ;;  %p53_p13 = scmp.ne.s32.totalorder %s2652_s30, %s2648_s29 }
  0x91   : > { %p355_p0 = scmp.eq.s32.totalorder %s2777_s19, 1  ;;  %p3245_p5 = scmp.eq.s32.totalorder %s2777_s19, 0 }
  0x92   : > { %s2933_s17 = scalar_select %p38_p1, %s2656_s15, %s40_s2  }
  0x93   : > { %p49_p2 = por %p48_p3, %p47_p8  ;;  %p2937_p7 = por %p3245_p5, %p53_p13 }
  0x94   : > { %p2941_p6 = por %p355_p0, %p47_p8  ;;  %p361_p9 = scmp.eq.s32.totalorder %s1954_s23, 1 }
  0x95   : > { %p2252_p10 = scmp.lt.s32.totalorder %s2660_s16, 2  ;;  %s465_s26 = sand.u32 1, %s2656_s15  }
  0x96   : > { %s3247_s27 = scalar_select %p2941_p6, 1, 0 }
  0x97   : > { %p2947_p11 = por %p361_p9, %p53_p13  ;;  %s1962_s22 = sshll.u32 %s465_s26, 3 }
  0x98   : > { %s1963_s25 = sshll.u32 %s2660_s16, 7  ;;  %s469_s6 = scalar_lea.vmem [#allocation2], %s1962_s22 }
  0x99   : > { %s3248_s18 = scalar_select %p2947_p11, 1, 0 }
  0x9a   : > { %s2955_s13 = scalar_lea.hbm %s3211_s0, %s1963_s25  ;;  %s476_s11 = sshll.u32 %s469_s6, 4  ;;  %s2961_s11 = int_to_ptr.vmem [resolvable:$true] %s476_s11 }
  0x9b   : > { %p2957_p12 = pnand %p2252_p10, %p49_p2  ;;  %s466_s2 = scalar_lea.sflag [#allocation3], %s465_s26 }
  0x9c   : > { %s2552_s28 = scalar_lea.hbm %s2955_s13, 128  ;;  %s2557_s24 = scalar_lea.hbm %s3211_s0, 256 }
  0x9d   : > { %p2553_p4 = scmp.ne.s32.totalorder %s2955_s13, %s2552_s28  ;;  %p2554_p8 = pneg %p2957_p12 }
  0x9e   : > { %p2558_p13 = scmp.lt.u32.totalorder %s2955_s13, %s3211_s0  ;;  %p2559_p0 = scmp.lt.u32.totalorder %s2557_s24, %s2552_s28 }
  0x9f   : > { %p2555_p1 = pnand %p2554_p8, %p2553_p4  ;;  %p2561_p5 = scmp.lt.u32.totalorder %s2552_s28, %s2955_s13 }
  0xa0   : > { %p2560_p2 = por %p2559_p0, %p2558_p13 }
  0xa1   : > { %p2556_p3 = pneg %p2555_p1 }
  0xa2   : > { %p2562_p9 = por %p2561_p5, %p2560_p2 }
  0xa4   : > { %p2563_p10 = pnand %p2562_p9, %p2556_p3 }
  0xa6   : > { %2566 = shalt.err (!%p2563_p10)
}
  0xa7   : > { %s2567_s26 = scalar_lea.vmem %s2961_s11, 128  ;;  %s2673_s25 = smov [#allocation2]  }
  0xa8   : > { %p2568_p4 = scmp.ne.s32.totalorder %s2961_s11, %s2567_s26  ;;  %s2572_s22 = sshll.u32 %s2673_s25, 4  ;;  %s2573_s22 = int_to_ptr.vmem [resolvable:$false] %s2572_s22 }
  0xa9   : > { %s2574_s9 = scalar_lea.vmem %s2573_s22, 256  ;;  %p2575_p6 = scmp.lt.s32.totalorder %s2961_s11, %s2573_s22 }
  0xaa   : > { %p2570_p1 = pnand %p2568_p4, %p2554_p8  ;;  %p2576_p13 = scmp.lt.s32.totalorder %s2574_s9, %s2567_s26 }
  0xac   : > { %p2571_p11 = pneg %p2570_p1  ;;  %p2577_p0 = por %p2576_p13, %p2575_p6 }
  0xae   : > { %p2578_p2 = pnand %p2577_p0, %p2571_p11 }
  0xb0   : > { %2581 = shalt.err (!%p2578_p2)
}
  0xb1   : > { %2242 = dma.hbm_to_vmem [thread:$0]  (!%p2957_p12), %s2955_s13, 128, %s2961_s11, %s466_s2  }
  0xb2   : > { %p3250_p3 = scmp.ne.s32.totalorder %s3238_s20, 0 }
  0xb3   : > { %s2991_s28 = sand.u32 (!%p3250_p3), 1, %s2652_s30  }
  0xb4   : > { %491 = sbr.rel (%p3250_p3) target bundleno = 2777 (0xad9), region = 76  ;;  %s1965_s24 = sshll.u32 (!%p3250_p3), %s2991_s28, 3 }
  0xb5   : > { %s494_s6 = scalar_lea.sflag (!%p3250_p3), [#allocation3], %s2991_s28  ;;  %s497_s26 = scalar_lea.vmem (!%p3250_p3), [#allocation2], %s1965_s24 }
  0xbb   : > { %2627 = dma.done.wait (%p2937_p7), %s494_s6, 128  }
  0xbc   : > { %2629 = vsyncadd (%p2937_p7), %s494_s6, 4294967168  ;;  %p3251_p6 = scmp.eq.s32.totalorder %s2777_s19, 0 }
  0xbe   : > { %2631 = dma.done.wait (%p3251_p6), [#allocation6], 3088   ;;  %p3252_p11 = pmov %p3251_p6 }
  0xbf   : > { %p3253_p12 = pmov %p3251_p6 }
  0xc0   : > { %2633 = vsyncadd (%p3252_p11), [#allocation6], 4294964208 }
  0xc1   : > { %2635 = dma.done.wait (%p3253_p12), [#allocation9], 3072   ;;  %p3254_p8 = pmov %p3251_p6 }
  0xc2   : > { %p3255_p5 = pmov %p3251_p6 }
  0xc3   : > { %2637 = vsyncadd (%p3254_p8), [#allocation9], 4294964224 }
  0xc4   : > { %2639 = dma.done.wait (%p3255_p5), [#allocation12], 2048   ;;  %p3256_p9 = pmov %p3255_p5 }
  0xc5   : > { %v3013_v0 = vld [vmem:[%s497_s26] sm:$0xff]  ;;  %v2674_v8 = vmov 0.0   ;;  %v2675_v22 = vmov 0   ;;  %vm2676_vm0 = vmmov 0   ;;  %v1972_v40 = vld [vmem:[#allocation5] ss:$0 sm:$0xff]  ;;  %v640_v46 = vlaneseq }
  0xc6   : > { %2641 = vsyncadd (%p3256_p9), [#allocation12], 4294965248  ;;  %572 = vadd.xlane.f32.xlu0 %v3013_v0  ;;  %v2308_v5 = vld [vmem:[#allocation7 + $0x4] ss:$12 sps:$4 sm:$0xff]   ;;  %v2310_v6 = vld [vmem:[#allocation7] ss:$12 sps:$4 sm:$0xff]   ;;  %2111 = vmatprep.subr.bf16.mxu1 %v2674_v8 }
  0xc7   : > { %v2311_v7 = vld [vmem:[#allocation7 + $0x8] ss:$12 sps:$4 sm:$0xff]   ;;  %783 = vmatprep.subr.bf16.mxu0 %v2308_v5  ;;  %v2314_v10 = vld [vmem:[#allocation7 + $0x18] ss:$12 sps:$4 sm:$0xff]   ;;  %v2315_v11 = vld [vmem:[#allocation7 + $0x20] ss:$12 sps:$4 sm:$0xff]   ;;  %815 = vmatprep.mubr.bf16.mxu0 %v2675_v22 }
  0xc8   : > { %784 = vmatpush1.bf16.msra.mxu0 %v2310_v6  ;;  %2112 = vmatpush3.bf16.msra.mxu1 %v2311_v7  ;;  %v2312_v9 = vld [vmem:[#allocation7 + $0x1c] ss:$12 sps:$4 sm:$0xff]   ;;  %v2316_v12 = vld [vmem:[#allocation7 + $0x34] ss:$12 sps:$4 sm:$0xff]   ;;  %v2319_v14 = vld [vmem:[#allocation7 + $0x38] ss:$12 sps:$4 sm:$0xff]  }
  0xc9   : > { %2113 = vmatprep.subr.bf16.mxu1 %v2674_v8  ;;  %785 = vmatprep.subr.bf16.mxu0 %v2312_v9  ;;  %v2318_v13 = vld [vmem:[#allocation7 + $0x30] ss:$12 sps:$4 sm:$0xff]   ;;  %v2320_v15 = vld [vmem:[#allocation7 + $0x4c] ss:$12 sps:$4 sm:$0xff]   ;;  %v2322_v16 = vld [vmem:[#allocation7 + $0x48] ss:$12 sps:$4 sm:$0xff]  }
  0xca   : > { %v2323_v17 = vld [vmem:[#allocation7 + $0x50] ss:$12 sps:$4 sm:$0xff]   ;;  %v2326_v19 = vld [vmem:[#allocation7 + $0x60] ss:$12 sps:$4 sm:$0xff]   ;;  %v2327_v20 = vld [vmem:[#allocation7 + $0x68] ss:$12 sps:$4 sm:$0xff]   ;;  %2127 = vmatprep.mubr.msk.bf16.mxu1 %vm2676_vm0, %v2674_v8 }
  0xcb   : > { %v2324_v18 = vld [vmem:[#allocation7 + $0x64] ss:$12 sps:$4 sm:$0xff]   ;;  %v2328_v21 = vld [vmem:[#allocation7 + $0x7c] ss:$12 sps:$4 sm:$0xff]   ;;  %v2331_v24 = vld [vmem:[#allocation7 + $0x80] ss:$12 sps:$4 sm:$0xff]  }
  0xcc   : > { %786 = vmatpush1.bf16.msra.mxu0 %v2314_v10  ;;  %2114 = vmatpush3.bf16.msra.mxu1 %v2315_v11  ;;  %v2330_v23 = vld [vmem:[#allocation7 + $0x78] ss:$12 sps:$4 sm:$0xff]   ;;  %v2332_v25 = vld [vmem:[#allocation7 + $0x94] ss:$12 sps:$4 sm:$0xff]   ;;  %v2334_v26 = vld [vmem:[#allocation7 + $0x90] ss:$12 sps:$4 sm:$0xff]  }
  0xcd   : > { %2115 = vmatprep.subr.bf16.mxu1 %v2674_v8  ;;  %787 = vmatprep.subr.bf16.mxu0 %v2316_v12  ;;  %v2335_v27 = vld [vmem:[#allocation7 + $0x98] ss:$12 sps:$4 sm:$0xff]   ;;  %v2338_v29 = vld [vmem:[#allocation7 + $0xa8] ss:$12 sps:$4 sm:$0xff]   ;;  %v2339_v30 = vld [vmem:[#allocation7 + $0xb0] ss:$12 sps:$4 sm:$0xff]  }
  0xce   : > { %v2336_v28 = vld [vmem:[#allocation7 + $0xac] ss:$12 sps:$4 sm:$0xff]   ;;  %v3042_v47 = vshrl.u32 %v640_v46, 7  ;;  %vm1136_vm3 = vcmask 1043456   ;;  %vm888_vm4 = vcmask 261120   ;;  %s2677_s23 = smov 64  }
  0xcf   : > { %v1973_v42 = vld [vmem:[%s3214_s3] ss:$0 sm:$0xff]  ;;  %s2678_s2 = smov 96   ;;  %s2679_s25 = smov 32   ;;  %vm1084_vm5 = vcmask 64512   ;;  %vm1331_vm6 = vcmask 523264  }
  0xd0   : > { %788 = vmatpush1.bf16.msra.mxu0 %v2318_v13  ;;  %2116 = vmatpush3.bf16.msra.mxu1 %v2319_v14  ;;  %v650_v48 = vsub.s32 2, %v3042_v47  ;;  %v638_v49 = vld [vmem:[%s3216_s5] sm:$0x7]  ;;  %v646_v50 = vsub.s32 1, %v3042_v47  ;;  %v642_v51 = vsub.s32 0, %v3042_v47  ;;  %p565_p7 = scmp.lt.s32.totalorder %s2777_s19, 1 }
  0xd1   : > { %2117 = vmatprep.subr.bf16.mxu1 %v2674_v8  ;;  %789 = vmatprep.subr.bf16.mxu0 %v2320_v15  ;;  %vm1333_vm7 = vcmask 785408   ;;  %s3258_s6 = sld [smem:[#allocation22_spill]]  ;;  %s3259_s14 = sld [smem:[#allocation23_spill]] }
  0xd2   : > { %v651_v52 = vrot.slane %v638_v49, %v650_v48  ;;  %v647_v53 = vrot.slane %v638_v49, %v646_v50  ;;  %v643_v56 = vrot.slane %v638_v49, %v642_v51  ;;  %s566_s22 = scalar_select %p565_p7, %s2777_s19, 1 }
  0xd3   : > { %s2052_s13 = sshll.u32 %s2777_s19, 7  ;;  %s564_s11 = scalar_lea.vmem [#allocation13], %s1965_s24 }
  0xd4   : > { %790 = vmatpush1.bf16.msra.mxu0 %v2322_v16  ;;  %2118 = vmatpush3.bf16.msra.mxu1 %v2323_v17  ;;  %s567_s26 = scalar_lea.vmem %s3212_s1, %s566_s22  ;;  %s3260_s22 = sld [smem:[#allocation24_spill]] }
  0xd5   : > { %791 = vmatprep.subr.bf16.mxu0 %v2324_v18  ;;  %2119 = vmatprep.subr.bf16.mxu1 %v2674_v8  ;;  %v2002_v18 = vld [vmem:[%s567_s26] ss:$0 sm:$0xff]  ;;  %p3261_p4 = scmp.ne.s32.totalorder %s3247_s27, 0  ;;  %s2680_s19 = smov [#allocation13]  }
  0xd6   : > { %s2586_s24 = sshll.u32 %s2680_s19, 4  ;;  %s2587_s24 = int_to_ptr.vmem [resolvable:$false] %s2586_s24 }
  0xd7   : > { %v2034_v47 = vld [vmem:[%s3259_s14] ss:$0 sm:$0xff]  ;;  %s2588_s20 = scalar_lea.vmem %s2587_s24, 256 }
  0xd8   : > { %792 = vmatpush1.bf16.msra.mxu0 %v2326_v19  ;;  %2120 = vmatpush3.bf16.msra.mxu1 %v2327_v20 }
  0xd9   : > { %793 = vmatprep.subr.bf16.mxu0 %v2328_v21  ;;  %2121 = vmatprep.subr.bf16.mxu1 %v2674_v8 }
  0xda   : > { %s3167_s9 = scalar_lea.hbm %s3260_s22, %s2052_s13 }
  0xdc   : > { %794 = vmatpush1.bf16.msra.mxu0 %v2330_v23  ;;  %2122 = vmatpush3.bf16.msra.mxu1 %v2331_v24 }
  0xdd   : > { %795 = vmatprep.subr.bf16.mxu0 %v2332_v25  ;;  %2123 = vmatprep.subr.bf16.mxu1 %v2674_v8 }
  0xe0   : > { %796 = vmatpush1.bf16.msra.mxu0 %v2334_v26  ;;  %2124 = vmatpush3.bf16.msra.mxu1 %v2335_v27 }
  0xe1   : > { %797 = vmatprep.subr.bf16.mxu0 %v2336_v28  ;;  %2125 = vmatprep.subr.bf16.mxu1 %v2674_v8 }
  0xe4   : > { %798 = vmatpush1.bf16.msra.mxu0 %v2338_v29  ;;  %2126 = vmatpush3.bf16.msra.mxu1 %v2339_v30 }
  0xe5   : > { %2155 = vmatprep.subr.bf16.mxu0 %v2674_v8  ;;  %2131 = vmatprep.subr.bf16.mxu1 %v2674_v8 }
 0x153   : > { %v573_v1 = vpop.xlane.xlu0 %572 }
 0x154   : > { %v575_v2 = vmul.f32 0.0078125, %v573_v1 }
 0x156   : > { %v3017_v3 = vsub.f32 %v3013_v0, %v575_v2 }
 0x158   : > { %v577_v4 = vmul.f32 %v3017_v3, %v3017_v3 }
 0x15a   : > { %578 = vadd.xlane.f32.xlu0 %v577_v4 }
 0x1e7   : > { %v579_v31 = vpop.xlane.xlu0 %578 }
 0x1e8   : > { %v580_v32 = vmul.f32 0.007874016, %v579_v31 }
 0x1ea   : > { %2388 = vrsqrt.f32 %v580_v32  ;;  %vm583_vm1 = vcmp.eq.f32.partialorder %v580_v32, inf  ;;  %v586_v35 = vand.u32 2147483648, %v580_v32  ;;  %vm585_vm2 = vcmp.eq.f32.partialorder %v580_v32, 0.0 }
 0x1f4   : > { %v2389_v33 = vpop.eup %2388 }
 0x1f5   : > { %v582_v34 = vmul.f32 %v2389_v33, %v580_v32 }
 0x1f7   : > { %v584_v36 = vsel %vm583_vm1, %v580_v32, %v582_v34 }
 0x1f8   : > { %v587_v37 = vsel %vm585_vm2, %v586_v35, %v584_v36 }
 0x1f9   : > { %v588_v38 = vadd.f32 1e-06, %v587_v37 }
 0x1fb   : > { %2390 = vrcp.f32 %v588_v38 }
 0x205   : > { %v2391_v39 = vpop.eup %2390 }
 0x206   : > { %v590_v41 = vmul.f32 %v2391_v39, %v3017_v3 }
 0x208   : > { %v597_v43 = vmul.f32 %v1972_v40, %v590_v41 }
 0x20a   : > { %v604_v44 = vadd.f32 %v1973_v42, %v597_v43 }
 0x20c   : > { %v605_v45 = vpack.c.bf16 %v604_v44, %v604_v44 }
 0x20e   : > { %816 = vmatmul.mubr.bf16.vlgmr.msra.gmra.mrb[0].mxu0 %v605_v45  ;;  %2128 = vmatmul.mubr.bf16.vlgmr.msra.gmra.mrb[0].mxu1 %v605_v45 }
 0x20f   : > { %2133 = vmatprep.mubr.msk.bf16.mxu1 %vm2676_vm0, %v2674_v8  ;;  %2157 = vmatprep.mubr.msk.bf16.mxu0 %vm2676_vm0, %v2674_v8 }
 0x2e1   : > { %v817_v54 = vpop.f32.mrb[0].mxu0  ;;  %v858_v55 = vpop.f32.mrb[0].mxu1 }
 0x2e2   : > { %v859_v57 = vadd.f32 %v858_v55, %v651_v52  ;;  %v819_v58 = vpop.f32.mrb[1].mxu0  ;;  %v2129_v59 = vpop.f32.mrb[1].mxu1  ;;  %v818_v4 = vadd.f32 %v817_v54, %v643_v56 }
 0x2e3   : > { %v820_v60 = vadd.f32 %v819_v58, %v647_v53  ;;  %v821_v61 = vpop.f32.mrb[2].mxu0  ;;  %v861_v62 = vpop.f32.mrb[2].mxu1 }
 0x2e4   : > { %v3054_v63 = vpack.c.bf16 %v859_v57, %v859_v57  ;;  %v822_v1 = vpop.f32.mrb[3].mxu0  ;;  %v2130_v2 = vpop.f32.mrb[3].mxu1  ;;  %v864_v7 = vpack.c.bf16 %v818_v4, %v818_v4 }
 0x2e5   : > { %v865_v3 = vpack.c.bf16 %v820_v60, %v820_v60 }
 0x2e6   : > { %v1138_v5 = vsel %vm1136_vm3, %v3054_v63, 0 }
 0x2e7   : > { %2156 = vmatpush3.bf16.msra.mxu0 %v1138_v5  ;;  %877 = vrot.lane.b32.xlu0 %v865_v3, %s2677_s23  ;;  %v893_v6 = vsel %vm888_vm4, %v865_v3, 0 }
 0x2e8   : > { %875 = vrot.lane.b32.xlu1 %v865_v3, %s2678_s2  ;;  %2132 = vmatpush3.bf16.xpose.msra.mxu1 %v893_v6 }
 0x2e9   : > { %2137 = vmatprep.subr.bf16.mxu1 %v2674_v8  ;;  %2167 = vmatprep.subr.bf16.mxu0 %v2674_v8 }
 0x2ec   : > { %868 = vrot.lane.b32.xlu1 %v864_v7, %s2678_s2 }
 0x2ef   : > { %2134 = vmatmul.mubr.msk.bf16.vlgmr.msra.gmra.mrb[4].mxu1 %vm888_vm4, %v864_v7 }
 0x2f0   : > { %870 = vrot.lane.b32.xlu1 %v864_v7, %s2677_s23  ;;  %2139 = vmatprep.mubr.msk.bf16.mxu1 %vm2676_vm0, %v2674_v8 }
 0x2f4   : > { %879 = vrot.lane.b32.xlu1 %v865_v3, %s2679_s25 }
 0x2f8   : > { %872 = vrot.lane.b32.xlu1 %v864_v7, %s2679_s25 }
 0x359   : > { %v878_v12 = vpop.permute.xlu0 %877 }
 0x35a   : > { %v876_v9 = vpop.permute.xlu1 %875  ;;  %v985_v14 = vsel %vm888_vm4, %v878_v12, 0 }
 0x35b   : > { %v939_v10 = vsel %vm888_vm4, %v876_v9, 0 }
 0x35c   : > { %2138 = vmatpush3.bf16.xpose.msra.mxu1 %v939_v10 }
 0x35d   : > { %2143 = vmatprep.subr.bf16.mxu1 %v2674_v8 }
 0x35e   : > { %v869_v11 = vpop.permute.xlu1 %868 }
 0x362   : > { %v871_v13 = vpop.permute.xlu1 %870 }
 0x363   : > { %2140 = vmatmul.mubr.msk.bf16.vlgmr.msra.gmra.mrb[8].mxu1 %vm888_vm4, %v869_v11 }
 0x364   : > { %2144 = vmatpush3.bf16.xpose.msra.mxu1 %v985_v14  ;;  %2145 = vmatprep.mubr.msk.bf16.mxu1 %vm2676_vm0, %v2674_v8 }
 0x365   : > { %2149 = vmatprep.subr.bf16.mxu1 %v2674_v8 }
 0x366   : > { %v880_v15 = vpop.permute.xlu1 %879 }
 0x367   : > { %v1031_v16 = vsel %vm888_vm4, %v880_v15, 0 }
 0x36a   : > { %v873_v17 = vpop.permute.xlu1 %872 }
 0x36b   : > { %2146 = vmatmul.mubr.msk.bf16.vlgmr.msra.gmra.mrb[12].mxu1 %vm888_vm4, %v871_v13 }
 0x36c   : > { %2150 = vmatpush3.bf16.xpose.msra.mxu1 %v1031_v16  ;;  %2151 = vmatprep.mubr.msk.bf16.mxu1 %vm2676_vm0, %v2674_v8 }
 0x36d   : > { %2161 = vmatprep.subr.bf16.mxu1 %v2674_v8 }
 0x373   : > { %2152 = vmatmul.mubr.msk.bf16.vlgmr.msra.gmra.mrb[16].mxu1 %vm888_vm4, %v873_v17 }
 0x374   : > { %2163 = vmatprep.mubr.msk.bf16.mxu1 %vm2676_vm0, %v2674_v8 }
 0x3c2   : > { %v929_v19 = vpop.f32.mrb[4].mxu1 }
 0x3c3   : > { %v1080_v20 = vadd.f32 %v2002_v18, %v929_v19  ;;  %v2135_v21 = vpop.f32.mrb[5].mxu1 }
 0x3c4   : > { %v932_v23 = vpop.f32.mrb[6].mxu1 }
 0x3c5   : > { %v2136_v24 = vpop.f32.mrb[7].mxu1  ;;  %v1085_v25 = vsel %vm1084_vm5, %v1080_v20, -inf }
 0x3c6   : > { %1086 = vmax.xlane.f32.xlu1 %v1085_v25 }
 0x436   : > { %v975_v26 = vpop.f32.mrb[8].mxu1 }
 0x437   : > { %v1081_v27 = vadd.f32 %v2002_v18, %v975_v26  ;;  %v2141_v28 = vpop.f32.mrb[9].mxu1 }
 0x438   : > { %v978_v29 = vpop.f32.mrb[10].mxu1 }
 0x439   : > { %v2142_v30 = vpop.f32.mrb[11].mxu1  ;;  %v1088_v31 = vsel %vm1084_vm5, %v1081_v27, -inf }
 0x43a   : > { %1089 = vmax.xlane.f32.xlu0 %v1088_v31 }
 0x43e   : > { %v1021_v32 = vpop.f32.mrb[12].mxu1 }
 0x43f   : > { %v1082_v33 = vadd.f32 %v2002_v18, %v1021_v32  ;;  %v2147_v34 = vpop.f32.mrb[13].mxu1  ;;  %v2340_v32 = vld [vmem:[#allocation8] sm:$0xff]  }
 0x440   : > { %v1024_v35 = vpop.f32.mrb[14].mxu1 }
 0x441   : > { %v2148_v36 = vpop.f32.mrb[15].mxu1  ;;  %v1091_v37 = vsel %vm1084_vm5, %v1082_v33, -inf }
 0x442   : > { %1092 = vmax.xlane.f32.xlu1 %v1091_v37  ;;  %v2342_v36 = vld [vmem:[#allocation8 + $0x10] sm:$0xff]  }
 0x446   : > { %v1067_v38 = vpop.f32.mrb[16].mxu1 }
 0x447   : > { %v1083_v39 = vadd.f32 %v2002_v18, %v1067_v38  ;;  %v2153_v40 = vpop.f32.mrb[17].mxu1 }
 0x448   : > { %v1070_v41 = vpop.f32.mrb[18].mxu1 }
 0x449   : > { %v2154_v42 = vpop.f32.mrb[19].mxu1  ;;  %v1094_v43 = vsel %vm1084_vm5, %v1083_v39, -inf }
 0x44a   : > { %1095 = vmax.xlane.f32.xlu1 %v1094_v43  ;;  %v2344_v42 = vld [vmem:[#allocation8 + $0x20] sm:$0xff]  }
 0x453   : > { %v1087_v44 = vpop.xlane.xlu1 %1086 }
 0x454   : > { %v1097_v45 = vsub.f32 %v1080_v20, %v1087_v44  ;;  %v2345_v44 = vld [vmem:[#allocation8 + $0x28] sm:$0xff]  }
 0x456   : > { %v1101_v46 = vmul.f32 1.442695, %v1097_v45  ;;  %v2346_v45 = vld [vmem:[#allocation8 + $0x30] sm:$0xff]  }
 0x458   : > { %2392 = vpow2.f32 %v1101_v46  ;;  %v2347_v46 = vld [vmem:[#allocation8 + $0x38] sm:$0xff]  }
 0x462   : > { %v2393_v48 = vpop.eup %2392 }
 0x463   : > { %v1109_v49 = vsel %vm1084_vm5, %v2393_v48, 0.0 }
 0x464   : > { %1110 = vadd.xlane.f32.xlu0 %v1109_v49 }
 0x4c7   : > { %v1090_v52 = vpop.xlane.xlu0 %1089 }
 0x4c8   : > { %v1098_v53 = vsub.f32 %v1081_v27, %v1090_v52 }
 0x4ca   : > { %v1103_v54 = vmul.f32 1.442695, %v1098_v53 }
 0x4cc   : > { %2394 = vpow2.f32 %v1103_v54 }
 0x4cf   : > { %v1093_v55 = vpop.xlane.xlu1 %1092 }
 0x4d0   : > { %v1099_v56 = vsub.f32 %v1082_v33, %v1093_v55  ;;  %v2341_v33 = vld [vmem:[#allocation8 + $0x8] sm:$0xff]  }
 0x4d2   : > { %v1105_v57 = vmul.f32 1.442695, %v1099_v56 }
 0x4d4   : > { %2396 = vpow2.f32 %v1105_v57 }
 0x4d6   : > { %v2395_v58 = vpop.eup %2394 }
 0x4d7   : > { %v1112_v59 = vsel %vm1084_vm5, %v2395_v58, 0.0  ;;  %v1096_v1 = vpop.xlane.xlu1 %1095 }
 0x4d8   : > { %1113 = vadd.xlane.f32.xlu1 %v1112_v59  ;;  %v1100_v2 = vsub.f32 %v1083_v39, %v1096_v1 }
 0x4da   : > { %v1107_v3 = vmul.f32 1.442695, %v1100_v2 }
 0x4de   : > { %v2397_v60 = vpop.eup %2396 }
 0x4df   : > { %v1115_v61 = vsel %vm1084_vm5, %v2397_v60, 0.0 }
 0x4e0   : > { %1116 = vadd.xlane.f32.xlu0 %v1115_v61 }
 0x4e9   : > { %884 = vrot.lane.b32.xlu1 %v3054_v63, %s2677_s23 }
 0x4f1   : > { %v1111_v62 = vpop.xlane.xlu0 %1110 }
 0x4f2   : > { %2398 = vrcp.f32 %v1111_v62 }
 0x4f3   : > { %2400 = vpow2.f32 %v1107_v3 }
 0x4f6   : > { %882 = vrot.lane.b32.xlu0 %v3054_v63, %s2678_s2 }
 0x4fc   : > { %v2399_v4 = vpop.eup %2398 }
 0x4fd   : > { %v1125_v5 = vmul.f32 %v2399_v4, %v2393_v48  ;;  %v2401_v7 = vpop.eup %2400 }
 0x4fe   : > { %v1118_v9 = vsel %vm1084_vm5, %v2401_v7, 0.0 }
 0x4ff   : > { %v1129_v6 = vpack.c.bf16 %v1125_v5, %v1125_v5 }
 0x501   : > { %2158 = vmatmul.mubr.msk.bf16.vlgmr.msra.gmra.mrb[4].mxu0 %vm1084_vm5, %v1129_v6 }
 0x502   : > { %2169 = vmatprep.mubr.msk.bf16.mxu0 %vm2676_vm0, %v2674_v8 }
 0x50d   : > { %1119 = vadd.xlane.f32.xlu1 %v1118_v9 }
 0x51e   : > { %886 = vrot.lane.b32.xlu1 %v3054_v63, %s2679_s25 }
 0x565   : > { %v1114_v10 = vpop.xlane.xlu1 %1113 }
 0x566   : > { %2402 = vrcp.f32 %v1114_v10  ;;  %v2350_v10 = vld [vmem:[#allocation10 + $0x4] ss:$8 sps:$4 sm:$0xff]  }
 0x569   : > { %v885_v11 = vpop.permute.xlu1 %884 }
 0x56a   : > { %v1230_v12 = vsel %vm1136_vm3, %v885_v11, 0  ;;  %v2348_v11 = vld [vmem:[#allocation10] ss:$8 sps:$4 sm:$0xff]  }
 0x56b   : > { %2168 = vmatpush3.bf16.msra.mxu0 %v1230_v12  ;;  %v2353_v12 = vld [vmem:[#allocation10 + $0x14] ss:$8 sps:$4 sm:$0xff]  }
 0x56c   : > { %2179 = vmatprep.subr.bf16.mxu0 %v2674_v8 }
 0x56d   : > { %v1117_v13 = vpop.xlane.xlu0 %1116 }
 0x56e   : > { %2404 = vrcp.f32 %v1117_v13  ;;  %v2351_v13 = vld [vmem:[#allocation10 + $0x10] ss:$8 sps:$4 sm:$0xff]  }
 0x570   : > { %v2403_v14 = vpop.eup %2402 }
 0x571   : > { %v1126_v15 = vmul.f32 %v2403_v14, %v2395_v58  ;;  %v883_v16 = vpop.permute.xlu0 %882  ;;  %v2354_v14 = vld [vmem:[#allocation10 + $0x20] ss:$8 sps:$4 sm:$0xff]  }
 0x572   : > { %v1184_v17 = vsel %vm1136_vm3, %v883_v16, 0  ;;  %v2357_v16 = vld [vmem:[#allocation10 + $0x30] ss:$8 sps:$4 sm:$0xff]  }
 0x573   : > { %2162 = vmatpush3.bf16.msra.mxu1 %v1184_v17  ;;  %v1130_v18 = vpack.c.bf16 %v1126_v15, %v1126_v15  ;;  %v2359_v15 = vld [vmem:[#allocation10 + $0x34] ss:$8 sps:$4 sm:$0xff]   ;;  %v2360_v17 = vld [vmem:[#allocation10 + $0x40] ss:$8 sps:$4 sm:$0xff]  }
 0x574   : > { %2173 = vmatprep.subr.bf16.mxu1 %v2674_v8 }
 0x576   : > { %2164 = vmatmul.mubr.msk.bf16.vlgmr.msra.gmra.mrb[20].mxu1 %vm1084_vm5, %v1130_v18  ;;  %v2362_v18 = vld [vmem:[#allocation10 + $0x44] ss:$8 sps:$4 sm:$0xff]  }
 0x577   : > { %2175 = vmatprep.mubr.msk.bf16.mxu1 %vm2676_vm0, %v2674_v8 }
 0x578   : > { %v2405_v63 = vpop.eup %2404 }
 0x579   : > { %v1127_v19 = vmul.f32 %v2405_v63, %v2397_v60  ;;  %v2365_v63 = vld [vmem:[#allocation10 + $0x54] ss:$8 sps:$4 sm:$0xff]  }
 0x57b   : > { %v1131_v20 = vpack.c.bf16 %v1127_v19, %v1127_v19  ;;  %v2363_v19 = vld [vmem:[#allocation10 + $0x50] ss:$8 sps:$4 sm:$0xff]  }
 0x57d   : > { %2170 = vmatmul.mubr.msk.bf16.vlgmr.msra.gmra.mrb[8].mxu0 %vm1084_vm5, %v1131_v20  ;;  %v2368_v20 = vld [vmem:[#allocation10 + $0x64] ss:$8 sps:$4 sm:$0xff]  }
 0x57e   : > { %2195 = vmatprep.mubr.msk.bf16.mxu0 %vm2676_vm0, %v2674_v8  ;;  %2180 = vmatpush3.bf16.msra.mxu0 %v2340_v32  ;;  %v2379_v32 = vld [vmem:[#allocation11 + $0x18] sm:$0xff]  }
 0x57f   : > { %2181 = vmatprep.subr.bf16.mxu0 %v2674_v8 }
 0x582   : > { %2182 = vmatpush3.bf16.msra.mxu0 %v2341_v33  ;;  %v2380_v33 = vld [vmem:[#allocation11 + $0x60] sm:$0xff]  }
 0x583   : > { %2183 = vmatprep.subr.bf16.mxu0 %v2674_v8 }
 0x586   : > { %2184 = vmatpush3.bf16.msra.mxu0 %v2342_v36  ;;  %v2383_v36 = vld [vmem:[#allocation11 + $0x28] sm:$0xff]  }
 0x587   : > { %2185 = vmatprep.subr.bf16.mxu0 %v2674_v8 }
 0x59a   : > { %v1120_v21 = vpop.xlane.xlu1 %1119 }
 0x59b   : > { %2406 = vrcp.f32 %v1120_v21  ;;  %v2366_v21 = vld [vmem:[#allocation10 + $0x60] ss:$8 sps:$4 sm:$0xff]  }
 0x59e   : > { %v887_v23 = vpop.permute.xlu1 %886 }
 0x59f   : > { %v1276_v24 = vsel %vm1136_vm3, %v887_v23, 0  ;;  %v2371_v23 = vld [vmem:[#allocation10 + $0x74] ss:$8 sps:$4 sm:$0xff]  }
 0x5a0   : > { %2174 = vmatpush3.bf16.msra.mxu1 %v1276_v24  ;;  %v2369_v24 = vld [vmem:[#allocation10 + $0x70] ss:$8 sps:$4 sm:$0xff]  }
 0x5a1   : > { %1591 = vmatprep.subr.bf16.mxu1 %v2350_v10 }
 0x5a5   : > { %v2407_v25 = vpop.eup %2406 }
 0x5a6   : > { %v1128_v26 = vmul.f32 %v2407_v25, %v2401_v7  ;;  %v2372_v25 = vld [vmem:[#allocation11 + $0x40] sm:$0xff]  }
 0x5a8   : > { %v1132_v27 = vpack.c.bf16 %v1128_v26, %v1128_v26  ;;  %v2373_v26 = vld [vmem:[#allocation11] sm:$0xff]  }
 0x5aa   : > { %2176 = vmatmul.mubr.msk.bf16.vlgmr.msra.gmra.mrb[24].mxu1 %vm1084_vm5, %v1132_v27  ;;  %v2374_v27 = vld [vmem:[#allocation11 + $0x48] sm:$0xff]  }
 0x5ab   : > { %1623 = vmatprep.mubr.bf16.mxu1 %v2675_v22  ;;  %v2343_v22 = vld [vmem:[#allocation8 + $0x18] sm:$0xff]   ;;  %1592 = vmatpush1.bf16.msra.mxu1 %v2348_v11 }
 0x5ac   : > { %2186 = vmatpush3.bf16.msra.mxu0 %v2343_v22  ;;  %1593 = vmatprep.subr.bf16.mxu1 %v2353_v12 }
 0x5ad   : > { %2187 = vmatprep.subr.bf16.mxu0 %v2674_v8 }
 0x5af   : > { %1594 = vmatpush1.bf16.msra.mxu1 %v2351_v13 }
 0x5b0   : > { %2188 = vmatpush3.bf16.msra.mxu0 %v2344_v42 }
 0x5b1   : > { %2189 = vmatprep.subr.bf16.mxu0 %v2674_v8 }
 0x5b4   : > { %2190 = vmatpush3.bf16.msra.mxu0 %v2345_v44 }
 0x5b5   : > { %2191 = vmatprep.subr.bf16.mxu0 %v2674_v8 }
 0x5b8   : > { %2192 = vmatpush3.bf16.msra.mxu0 %v2346_v45  ;;  %v2016_v45 = vld [vmem:[%s3219_s8] ss:$0 sm:$0xff] }
 0x5b9   : > { %2193 = vmatprep.subr.bf16.mxu0 %v2674_v8  ;;  %v2007_v8 = vld [vmem:[%s3218_s7] ss:$0 sm:$0xff] }
 0x5bc   : > { %2194 = vmatpush3.bf16.msra.mxu0 %v2347_v46 }
 0x5bd   : > { %2089 = vmatprep.subr.bf16.mxu0 %v2372_v25 }
 0x5d4   : > { %v1174_v28 = vpop.f32.mrb[4].mxu0 }
 0x5d5   : > { %v2159_v29 = vpop.f32.mrb[5].mxu0 }
 0x5d6   : > { %v1177_v30 = vpop.f32.mrb[6].mxu0  ;;  %v2376_v29 = vld [vmem:[#allocation11 + $0x50] sm:$0xff]  }
 0x5d7   : > { %v2160_v31 = vpop.f32.mrb[7].mxu0  ;;  %v2377_v30 = vld [vmem:[#allocation11 + $0x10] sm:$0xff]  }
 0x5d8   : > { %v2378_v31 = vld [vmem:[#allocation11 + $0x58] sm:$0xff]  }
 0x649   : > { %v1220_v34 = vpop.f32.mrb[20].mxu1 }
 0x64a   : > { %1319 = vrot.lane.b32.xlu0 %v1220_v34, %s2679_s25  ;;  %v2165_v35 = vpop.f32.mrb[21].mxu1  ;;  %v2381_v34 = vld [vmem:[#allocation11 + $0x20] sm:$0xff]   ;;  %s3257_s25 = sld [smem:[#allocation21_spill]] }
 0x64b   : > { %v1223_v37 = vpop.f32.mrb[22].mxu1  ;;  %v2382_v35 = vld [vmem:[#allocation11 + $0x68] sm:$0xff]  }
 0x64c   : > { %v2166_v38 = vpop.f32.mrb[23].mxu1 }
 0x650   : > { %v1266_v39 = vpop.f32.mrb[8].mxu0 }
 0x651   : > { %1323 = vrot.lane.b32.xlu1 %v1266_v39, %s2677_s23  ;;  %v2171_v40 = vpop.f32.mrb[9].mxu0  ;;  %s1827_s23 = sshll.u32 %s564_s11, 4  ;;  %s3169_s23 = int_to_ptr.vmem [resolvable:$true] %s1827_s23 }
 0x652   : > { %v1269_v41 = vpop.f32.mrb[10].mxu0  ;;  %s2582_s26 = scalar_lea.vmem %s3169_s23, 128  ;;  %p2589_p0 = scmp.lt.s32.totalorder %s3169_s23, %s2587_s24 }
 0x653   : > { %v2172_v43 = vpop.f32.mrb[11].mxu0  ;;  %p2583_p10 = scmp.ne.s32.totalorder %s3169_s23, %s2582_s26  ;;  %p2590_p2 = scmp.lt.s32.totalorder %s2588_s20, %s2582_s26 }
 0x655   : > { %p2584_p1 = pnand %p2583_p10, %p3261_p4  ;;  %p2591_p3 = por %p2590_p2, %p2589_p0 }
 0x657   : > { %p2585_p13 = pneg %p2584_p1 }
 0x659   : > { %p2592_p6 = pnand %p2591_p3, %p2585_p13 }
 0x67d   : > { %v1312_v48 = vpop.f32.mrb[24].mxu1 }
 0x67e   : > { %1327 = vrot.lane.b32.xlu0 %v1312_v48, %s2678_s2  ;;  %v2177_v49 = vpop.f32.mrb[25].mxu1  ;;  %v2017_v48 = vld [vmem:[%s3257_s25] ss:$0 sm:$0xff] }
 0x67f   : > { %v1315_v52 = vpop.f32.mrb[26].mxu1 }
 0x680   : > { %v2178_v53 = vpop.f32.mrb[27].mxu1 }
 0x6bc   : > { %v1320_v54 = vpop.permute.xlu0 %1319 }
 0x6bd   : > { %v1330_v56 = vsel %vm888_vm4, %v1174_v28, %v1320_v54  ;;  %v2375_v28 = vld [vmem:[#allocation11 + $0x8] sm:$0xff]   ;;  %v2384_v54 = vld [vmem:[#allocation11 + $0x70] sm:$0xff]  }
 0x6c3   : > { %v1324_v55 = vpop.permute.xlu1 %1323 }
 0x6c4   : > { %v1332_v57 = vsel %vm1331_vm6, %v1330_v56, %v1324_v55  ;;  %v2385_v55 = vld [vmem:[#allocation11 + $0x30] sm:$0xff]   ;;  %v2386_v56 = vld [vmem:[#allocation11 + $0x78] sm:$0xff]  }
 0x6f0   : > { %v1328_v58 = vpop.permute.xlu0 %1327 }
 0x6f1   : > { %v1334_v59 = vsel %vm1333_vm7, %v1332_v57, %v1328_v58  ;;  %v2387_v57 = vld [vmem:[#allocation11 + $0x38] sm:$0xff]   ;;  %v1499_v58 = vld [vmem:[%s3258_s6] sm:$0x3]  ;;  %s1814_s6 = scalar_lea.sflag [#allocation4], %s2991_s28 }
 0x6f2   : > { %v1335_v60 = vpack.c.bf16 %v1334_v59, %v1334_v59  ;;  %v1504_v59 = vrot.slane %v1499_v58, %v642_v51 }
 0x6f4   : > { %2196 = vmatmul.mubr.bf16.vlgmr.msra.gmra.mrb[12].mxu0 %v1335_v60  ;;  %v1508_v60 = vrot.slane %v1499_v58, %v646_v50 }
 0x6f5   : > { %2090 = vmatpush3.bf16.msra.mxu0 %v2373_v26 }
 0x6f6   : > { %2091 = vmatprep.subr.bf16.mxu0 %v2374_v27 }
 0x6f9   : > { %2092 = vmatpush3.bf16.msra.mxu0 %v2375_v28 }
 0x6fa   : > { %2093 = vmatprep.subr.bf16.mxu0 %v2376_v29 }
 0x6fd   : > { %2094 = vmatpush3.bf16.msra.mxu0 %v2377_v30 }
 0x6fe   : > { %2095 = vmatprep.subr.bf16.mxu0 %v2378_v31 }
 0x701   : > { %2096 = vmatpush3.bf16.msra.mxu0 %v2379_v32 }
 0x702   : > { %2097 = vmatprep.subr.bf16.mxu0 %v2380_v33 }
 0x705   : > { %2098 = vmatpush3.bf16.msra.mxu0 %v2381_v34 }
 0x706   : > { %2099 = vmatprep.subr.bf16.mxu0 %v2382_v35 }
 0x709   : > { %2100 = vmatpush3.bf16.msra.mxu0 %v2383_v36 }
 0x70a   : > { %2101 = vmatprep.subr.bf16.mxu0 %v2384_v54 }
 0x70d   : > { %2102 = vmatpush3.bf16.msra.mxu0 %v2385_v55 }
 0x70e   : > { %2103 = vmatprep.subr.bf16.mxu0 %v2386_v56 }
 0x711   : > { %2104 = vmatpush3.bf16.msra.mxu0 %v2387_v57 }
 0x7c7   : > { %v1441_v61 = vpop.f32.mrb[12].mxu0 }
 0x7c8   : > { %v1442_v62 = vadd.f32 %v2007_v8, %v1441_v61  ;;  %v2197_v1 = vpop.f32.mrb[13].mxu0 }
 0x7c9   : > { %v1444_v2 = vpop.f32.mrb[14].mxu0 }
 0x7ca   : > { %v3135_v3 = vadd.f32 %v1442_v62, %v3013_v0  ;;  %v2198_v4 = vpop.f32.mrb[15].mxu0  ;;  %v2356_v0 = vld [vmem:[#allocation10 + $0x24] ss:$8 sps:$4 sm:$0xff]  }
 0x7cb   : > { %1595 = vmatprep.subr.bf16.mxu1 %v2356_v0 }
 0x7cc   : > { %1450 = vadd.xlane.f32.xlu1 %v3135_v3  ;;  %1596 = vmatpush1.bf16.msra.mxu1 %v2354_v14 }
 0x7cd   : > { %1597 = vmatprep.subr.bf16.mxu1 %v2359_v15 }
 0x7d0   : > { %1598 = vmatpush1.bf16.msra.mxu1 %v2357_v16 }
 0x7d1   : > { %1599 = vmatprep.subr.bf16.mxu1 %v2362_v18 }
 0x7d4   : > { %1600 = vmatpush1.bf16.msra.mxu1 %v2360_v17 }
 0x7d5   : > { %1601 = vmatprep.subr.bf16.mxu1 %v2365_v63 }
 0x7d8   : > { %1602 = vmatpush1.bf16.msra.mxu1 %v2363_v19 }
 0x7d9   : > { %1603 = vmatprep.subr.bf16.mxu1 %v2368_v20 }
 0x7dc   : > { %1604 = vmatpush1.bf16.msra.mxu1 %v2366_v21 }
 0x7dd   : > { %1605 = vmatprep.subr.bf16.mxu1 %v2371_v23 }
 0x7e0   : > { %1606 = vmatpush1.bf16.msra.mxu1 %v2369_v24 }
 0x859   : > { %v1451_v5 = vpop.xlane.xlu1 %1450 }
 0x85a   : > { %v1452_v6 = vmul.f32 0.0078125, %v1451_v5 }
 0x85c   : > { %v3139_v7 = vsub.f32 %v3135_v3, %v1452_v6 }
 0x85e   : > { %v1454_v9 = vmul.f32 %v3139_v7, %v3139_v7 }
 0x860   : > { %1455 = vadd.xlane.f32.xlu0 %v1454_v9 }
 0x8ed   : > { %v1456_v37 = vpop.xlane.xlu0 %1455 }
 0x8ee   : > { %v1457_v38 = vmul.f32 0.007874016, %v1456_v37 }
 0x8f0   : > { %2408 = vrsqrt.f32 %v1457_v38  ;;  %vm1460_vm8 = vcmp.eq.f32.partialorder %v1457_v38, inf  ;;  %v1463_v40 = vand.u32 2147483648, %v1457_v38  ;;  %vm1462_vm9 = vcmp.eq.f32.partialorder %v1457_v38, 0.0 }
 0x8fa   : > { %v2409_v22 = vpop.eup %2408 }
 0x8fb   : > { %v1459_v39 = vmul.f32 %v2409_v22, %v1457_v38 }
 0x8fd   : > { %v1461_v41 = vsel %vm1460_vm8, %v1457_v38, %v1459_v39 }
 0x8fe   : > { %v1464_v42 = vsel %vm1462_vm9, %v1463_v40, %v1461_v41 }
 0x8ff   : > { %v1465_v43 = vadd.f32 1e-06, %v1464_v42 }
 0x901   : > { %2410 = vrcp.f32 %v1465_v43 }
 0x90b   : > { %v2411_v44 = vpop.eup %2410 }
 0x90c   : > { %v1467_v46 = vmul.f32 %v2411_v44, %v3139_v7 }
 0x90e   : > { %v1474_v49 = vmul.f32 %v2016_v45, %v1467_v46 }
 0x910   : > { %v1481_v52 = vadd.f32 %v2017_v48, %v1474_v49 }
 0x912   : > { %v1482_v53 = vpack.c.bf16 %v1481_v52, %v1481_v52 }
 0x914   : > { %1624 = vmatmul.mubr.bf16.vlgmr.msra.gmra.mrb[28].mxu1 %v1482_v53 }
 0x9e7   : > { %v1625_v8 = vpop.f32.mrb[28].mxu1 }
 0x9e8   : > { %v1626_v61 = vadd.f32 %v1625_v8, %v1504_v59  ;;  %v1627_v62 = vpop.f32.mrb[29].mxu1 }
 0x9e9   : > { %v1628_v1 = vadd.f32 %v1627_v62, %v1508_v60  ;;  %v1629_v2 = vpop.f32.mrb[30].mxu1 }
 0x9ea   : > { %v1632_v4 = vmax.f32 %v1626_v61, 0.0  ;;  %v1630_v5 = vpop.f32.mrb[31].mxu1 }
 0x9eb   : > { %v1633_v6 = vmax.f32 %v1628_v1, 0.0 }
 0x9ec   : > { %v1634_v9 = vpack.c.bf16 %v1632_v4, %v1632_v4 }
 0x9ed   : > { %v1635_v7 = vpack.c.bf16 %v1633_v6, %v1633_v6 }
 0x9ef   : > { %1803 = vmatprep.mubr.bf16.mxu0 %v1635_v7 }
 0x9f0   : > { %1804 = vmatmul.mubr.bf16.vlgmr.msra.gmra.mrb[16].mxu0 %v1634_v9 }
 0xac3   : > { %v2105_v10 = vpop.f32.mrb[16].mxu0 }
 0xac4   : > { %v2106_v50 = vpop.f32.mrb[17].mxu0 }
 0xac5   : > { %v2107_v51 = vadd.f32 %v2106_v50, %v2105_v10  ;;  %v2108_v11 = vpop.f32.mrb[18].mxu0 }
 0xac6   : > { %v2109_v12 = vpop.f32.mrb[19].mxu0 }
 0xac7   : > { %v1806_v13 = vadd.f32 %v2107_v51, %v2034_v47 }
 0xac9   : > { %v1811_v0 = vadd.f32 %v1806_v13, %v3135_v3 }
 0xacb   : > { %1812 = vst [vmem:[%s564_s11] sm:$0xff] %v1811_v0 }
 0xacc   : > { %2595 = shalt.err (!%p2592_p6)
}
 0xacd   : > { %s2596_s28 = scalar_lea.hbm %s3167_s9, 128  ;;  %s2600_s11 = scalar_lea.hbm %s3260_s22, 256 }
 0xace   : > { %p2597_p11 = scmp.ne.s32.totalorder %s3167_s9, %s2596_s28  ;;  %p2601_p5 = scmp.lt.u32.totalorder %s3167_s9, %s3260_s22 }
 0xacf   : > { %p2602_p9 = scmp.lt.u32.totalorder %s2600_s11, %s2596_s28  ;;  %p2604_p10 = scmp.lt.u32.totalorder %s2596_s28, %s3167_s9 }
 0xad0   : > { %p2598_p12 = pnand %p2597_p11, %p3261_p4 }
 0xad1   : > { %p2603_p7 = por %p2602_p9, %p2601_p5 }
 0xad2   : > { %p2599_p8 = pneg %p2598_p12 }
 0xad3   : > { %p2605_p1 = por %p2604_p10, %p2603_p7 }
 0xad5   : > { %p2606_p13 = pnand %p2605_p1, %p2599_p8 }
 0xad7   : > { %2609 = shalt.err (!%p2606_p13)
}
 0xad8   : > { %2221 = dma.vmem_to_hbm [thread:$0]  (%p3261_p4), %s3169_s23, 128, %s3167_s9, %s1814_s6  }
 0xad9 PF: > { %s1839_s26 = sand.u32 1, %s2648_s29   ;;  %p3262_p0 = scmp.ne.s32.totalorder %s3248_s18, 0 }
 0xada   : > { %p3263_p2 = scmp.ge.s32.totalorder %s2660_s16, 2  ;;  %s1840_s19 = scalar_lea.sflag [#allocation4], %s1839_s26 }
 0xadc   : > { %p2244_p3 = pnand %p3263_p2, %p3262_p0 }
 0xade   : > { %2643 = dma.done.wait (!%p2244_p3), %s1840_s19, 128  }
 0xadf   : > { %2645 = vsyncadd (!%p2244_p3), %s1840_s19, 4294967168  ;;  %p30_p6 = scmp.ge.s32.totalorder %s2921_s21, 4   ;;  %s3264_s29 = smov %s2652_s30 }
 0xae0   : > { %s3265_s30 = smov %s2656_s15  ;;  %s3266_s15 = smov %s2933_s17 }
 0xae1   : > { %s3267_s16 = smov %s2921_s21  ;;  %32 = sbr.rel (!%p30_p6) target bundleno = 15 (0xf), region = 144 }
 0xae8   :  { %1845 = vsyncpa [#allocation3], 1 }
 0xae9   :  { %1847 = vsyncpa [#allocation3 + $0x1], 1 }
 0xaea   :  { %1848 = vsyncpa [#allocation6], 1 }
 0xaeb   :  { %1849 = vsyncpa [#allocation9], 1 }
 0xaec   :  { %1850 = vsyncpa [#allocation12], 1 }
 0xaed   :  { %1851 = vsyncpa [#allocation4], 1 }
 0xaee   :  { %1853 = vsyncpa [#allocation4 + $0x1], 1 }

</bundles_post_ra>
